<compile_context>
chip_gen: v5e
topology: v5e:2x2
jax: 0.10.0
libtpu: 0.0.40
codegen_flags: <defaults>
</compile_context>

<pallas_src>
import jax
import jax.numpy as jnp
import numpy as np
from jax.experimental import pallas as pl
from jax.experimental.pallas import tpu as pltpu


# ----------------------------------------------------------------------------
# Pallas kernel: 3x3/s2 conv as a single MXU matmul (taps folded into K)
#                + folded conv-bias / eval-mode BN affine.
# ----------------------------------------------------------------------------
def _ms_downsample_kernel(x_ref, w_ref, scale_ref, bias_ref, out_ref):
    """
    x_ref    : (4, NB, Ho+1, Wo+1, C)  bf16 parity-split (2x2 space-to-depth)
               padded, post-spike input
    w_ref    : (9*C, Epad)             bf16 conv weights, rows ordered (dy,dx,c)
    scale_ref: (1, Epad) f32           folded eval-mode BN scale
    bias_ref : (1, Epad) f32           folded conv-bias + BN shift
    out_ref  : (NB, Ho*Wo, E)          bf16
    """
    nb, p, e = out_ref.shape
    _, _, hp1, wp1, c = x_ref.shape
    ho, wo = hp1 - 1, wp1 - 1
    rows = nb * ho * wo

    # Gather the 9 conv taps and fold them into the contraction dimension.
    # Tap (dy, dx) lives in parity plane (dy%2, dx%2) at offset (dy//2, dx//2).
    taps = []
    for dy in range(3):
        for dx in range(3):
            par = (dy % 2) * 2 + (dx % 2)
            taps.append(x_ref[par, :, dy // 2:dy // 2 + ho,
                              dx // 2:dx // 2 + wo, :])
    lhs = jnp.concatenate(taps, axis=-1).reshape(rows, 9 * c)        # bf16

    # Single MXU matmul, f32 accumulation.
    acc = jnp.dot(lhs, w_ref[...], preferred_element_type=jnp.float32)

    # Folded conv-bias + eval-mode BatchNorm affine (VPU, lane aligned).
    y = acc * scale_ref[...] + bias_ref[...]
    out_ref[...] = y[:, :e].astype(out_ref.dtype).reshape(nb, p, e)


# ----------------------------------------------------------------------------
# Wrapper
# ----------------------------------------------------------------------------
def ms_downsampling_forward(x, conv_w, conv_b, bn_gamma, bn_beta,
                            bn_mean, bn_var, *, first_layer: bool,
                            eps: float = 1e-5, norm: float = 8.0):
    """x: (T, B, C, H, W).  conv_w: (E, C, 3, 3) PyTorch OIHW.  k=3, s=2, p=1."""
    T, B, C, H, W = x.shape
    E = conv_w.shape[0]
    N = T * B
    Ho = (H - 1) // 2 + 1                # conv output size for k=3, s=2, p=1
    Wo = (W - 1) // 2 + 1
    P = Ho * Wo

    # ---- preamble (JAX): optional Multispike, bf16 cast, NHWC, conv padding,
    #      2x2 space-to-depth parity split (~1x the input bytes, all bf16).
    xn = x.reshape(N, C, H, W).astype(jnp.float32)
    if not first_layer:
        # Multispike: floor(clamp(x, 0, norm) + 0.5) / norm. Output is k/8,
        # k <= 64 -> exact in bf16; spike(0) == 0 so zero conv padding is exact.
        xn = jnp.floor(jnp.clip(xn, 0.0, norm) + 0.5) * (1.0 / norm)
    xn = jnp.transpose(xn.astype(jnp.bfloat16), (0, 2, 3, 1))        # (N,H,W,C)
    ph = 2 * Ho - H                                                  # 0 or 1
    pw = 2 * Wo - W
    xp = jnp.pad(xn, ((0, 0), (1, 1 + ph), (1, 1 + pw), (0, 0)))     # (N,2Ho+2,2Wo+2,C)
    xs = xp.reshape(N, Ho + 1, 2, Wo + 1, 2, C)
    xs = jnp.transpose(xs, (2, 4, 0, 1, 3, 5)).reshape(4, N, Ho + 1, Wo + 1, C)

    # ---- weights: (E,C,3,3) OIHW -> (9*C, Epad) bf16, rows ordered (dy,dx,c);
    #      folded conv-bias + eval-mode BN affine in f32.
    Epad = ((E + 127) // 128) * 128
    w = jnp.transpose(conv_w, (2, 3, 1, 0)).reshape(9 * C, E).astype(jnp.float32)
    w = jnp.pad(w, ((0, 0), (0, Epad - E))).astype(jnp.bfloat16)
    scale = (bn_gamma / jnp.sqrt(bn_var + eps)).astype(jnp.float32)  # (E,)
    bias = (bn_beta + (conv_b - bn_mean) * scale).astype(jnp.float32)
    scale = jnp.pad(scale, (0, Epad - E)).reshape(1, Epad)
    bias = jnp.pad(bias, (0, Epad - E)).reshape(1, Epad)

    # ---- tiling: count every double-buffered block against a VMEM budget that
    #      is safe on v5e/v6e/v7x; keep >= 2 grid steps (v7x megacore); pick NB
    #      dividing N when feasible (avoids a padded HBM copy of the input).
    in_bytes_per_n = 2 * 4 * (Ho + 1) * (Wo + 1) * C * 2             # x2 buffers
    out_bytes_per_n = 2 * P * E * 2                                  # x2 buffers
    fixed_bytes = 2 * (9 * C * Epad * 2) + 4 * (Epad * 4)
    budget = 20 << 20
    nb_cap = max(1, (budget - fixed_bytes) //
                 max(1, in_bytes_per_n + out_bytes_per_n))
    nb_cap = max(1, min(N, nb_cap))
    if N >= 2:
        nb_cap = min(nb_cap, -(-N // 2))          # at least 2 grid steps
    NB = 1
    for cand in range(nb_cap, 0, -1):             # largest divisor of N <= cap
        if N % cand == 0:
            NB = cand
            break
    if NB < max(1, nb_cap // 2):                  # divisor too small -> pad
        NB = nb_cap
    Npad = -(-N // NB) * NB
    if Npad != N:
        xs = jnp.pad(xs, ((0, 0), (0, Npad - N), (0, 0), (0, 0), (0, 0)))

    cost = pl.CostEstimate(
        flops=int(2 * Npad * P * 9 * C * Epad),
        transcendentals=0,
        bytes_accessed=int(xs.size) * 2 + int(w.size) * 2 + Npad * P * E * 2)

    out = pl.pallas_call(
        _ms_downsample_kernel,
        out_shape=jax.ShapeDtypeStruct((Npad, P, E), jnp.bfloat16),
        grid=(Npad // NB,),
        in_specs=[
            pl.BlockSpec((4, NB, Ho + 1, Wo + 1, C), lambda n: (0, n, 0, 0, 0)),
            pl.BlockSpec((9 * C, Epad), lambda n: (0, 0)),
            pl.BlockSpec((1, Epad), lambda n: (0, 0)),
            pl.BlockSpec((1, Epad), lambda n: (0, 0)),
        ],
        out_specs=pl.BlockSpec((NB, P, E), lambda n: (n, 0, 0)),
        compiler_params=pltpu.CompilerParams(
            dimension_semantics=("parallel",),
            vmem_limit_bytes=40 << 20),
        cost_estimate=cost,
    )(xs, w, scale, bias)

    # ---- epilogue (bf16): drop batch padding, NHWC -> NCHW, (T,B,E,Ho,Wo).
    out = out[:N] if Npad != N else out
    out = jnp.transpose(out.reshape(N, Ho, Wo, E), (0, 3, 1, 2))
    return out.reshape(T, B, E, Ho, Wo).astype(jnp.float32)


# ----------------------------------------------------------------------------
# Pure-JAX reference (lax conv, NCHW).  Mirrors the kernel's bf16-operand /
# f32-accumulate numerics (post-spike activations and weights rounded to bf16)
# so the check is tight; the kernel additionally rounds its output to bf16,
# which the tolerance below absorbs.
# ----------------------------------------------------------------------------
def ms_downsampling_ref(x, conv_w, conv_b, bn_gamma, bn_beta, bn_mean, bn_var,
                        *, first_layer: bool, eps: float = 1e-5,
                        norm: float = 8.0):
    T, B, C, H, W = x.shape
    xx = x.reshape(T * B, C, H, W).astype(jnp.float32)
    if not first_layer:
        xx = jnp.floor(jnp.clip(xx, 0.0, norm) + 0.5) / norm
    xx = xx.astype(jnp.bfloat16).astype(jnp.float32)
    ww = conv_w.astype(jnp.bfloat16).astype(jnp.float32)
    y = jax.lax.conv_general_dilated(
        xx, ww, window_strides=(2, 2), padding=((1, 1), (1, 1)),
        dimension_numbers=("NCHW", "OIHW", "NCHW"),
        preferred_element_type=jnp.float32)
    scale = bn_gamma / jnp.sqrt(bn_var + eps)
    bias = bn_beta + (conv_b - bn_mean) * scale
    y = y * scale[None, :, None, None] + bias[None, :, None, None]
    _, _, Ho, Wo = y.shape
    return y.reshape(T, B, -1, Ho, Wo)


if __name__ == "__main__":
    # Small shapes consistent with the module.
    T, B, C, H, W = 2, 2, 4, 16, 16
    E = 32                      # embed_dims

    key = jax.random.PRNGKey(0)
    kx, kw, kb, kg, kbe, km, kv = jax.random.split(key, 7)

    x = jax.random.uniform(kx, (T, B, C, H, W), jnp.float32,
                           minval=-1.0, maxval=9.0)
    conv_w = 0.1 * jax.random.normal(kw, (E, C, 3, 3), jnp.float32)
    conv_b = 0.1 * jax.random.normal(kb, (E,), jnp.float32)
    bn_gamma = jax.random.uniform(kg, (E,), jnp.float32, 0.5, 1.5)
    bn_beta = 0.1 * jax.random.normal(kbe, (E,), jnp.float32)
    bn_mean = 0.1 * jax.random.normal(km, (E,), jnp.float32)
    bn_var = jax.random.uniform(kv, (E,), jnp.float32, 0.5, 1.5)

    for first_layer in (False, True):       # exercise both spike / no-spike paths
        out = ms_downsampling_forward(x, conv_w, conv_b, bn_gamma, bn_beta,
                                      bn_mean, bn_var, first_layer=first_layer)
        out = jax.block_until_ready(out)
        ref = ms_downsampling_ref(x, conv_w, conv_b, bn_gamma, bn_beta,
                                  bn_mean, bn_var, first_layer=first_layer)
        ref = jax.block_until_ready(ref)
        assert out.shape == (T, B, E, H // 2, W // 2), out.shape
        np.testing.assert_allclose(np.asarray(out), np.asarray(ref),
                                   rtol=1e-2, atol=1e-2)

    print("KERNEL_OK")
</pallas_src>

<mosaic_0001>
module attributes {stable_mosaic.version = 11 : i64} {
  func.func @_ms_downsample_kernel(%arg0: i32, %arg1: memref<4x2x9x9x4xbf16, #tpu.memory_space<vmem>>, %arg2: memref<36x128xbf16, #tpu.memory_space<vmem>>, %arg3: memref<1x128xf32, #tpu.memory_space<vmem>>, %arg4: memref<1x128xf32, #tpu.memory_space<vmem>>, %arg5: memref<2x64x32xbf16, #tpu.memory_space<vmem>>) attributes {dimension_semantics = [#tpu.dimension_semantics<parallel>], iteration_bounds = array<i64: 2>, scalar_prefetch = 0 : i64, scratch_operands = 0 : i64, tpu.core_type = #tpu.core_type<tc>, window_params = [{transform_indices = @transform_0, window_bounds = array<i64: 4, 2, 9, 9, 4>}, {pipeline_mode = #tpu.pipeline_mode<synchronous>, transform_indices = @transform_1, window_bounds = array<i64: 36, 128>}, {pipeline_mode = #tpu.pipeline_mode<synchronous>, transform_indices = @transform_2, window_bounds = array<i64: 1, 128>}, {pipeline_mode = #tpu.pipeline_mode<synchronous>, transform_indices = @transform_3, window_bounds = array<i64: 1, 128>}, {transform_indices = @transform_4, window_bounds = array<i64: 2, 64, 32>}]} {
    %c0 = arith.constant 0 : index
    %c0_0 = arith.constant 0 : index
    %c0_1 = arith.constant 0 : index
    %c0_2 = arith.constant 0 : index
    %c0_3 = arith.constant 0 : index
    %0 = vector.load %arg1[%c0, %c0_0, %c0_1, %c0_2, %c0_3] : memref<4x2x9x9x4xbf16, #tpu.memory_space<vmem>>, vector<1x2x8x8x4xbf16>
    %1 = vector.shape_cast %0 : vector<1x2x8x8x4xbf16> to vector<2x8x8x4xbf16>
    %c1 = arith.constant 1 : index
    %c0_4 = arith.constant 0 : index
    %c0_5 = arith.constant 0 : index
    %c0_6 = arith.constant 0 : index
    %c0_7 = arith.constant 0 : index
    %2 = vector.load %arg1[%c1, %c0_4, %c0_5, %c0_6, %c0_7] : memref<4x2x9x9x4xbf16, #tpu.memory_space<vmem>>, vector<1x2x8x8x4xbf16>
    %3 = vector.shape_cast %2 : vector<1x2x8x8x4xbf16> to vector<2x8x8x4xbf16>
    %c0_8 = arith.constant 0 : index
    %c0_9 = arith.constant 0 : index
    %c0_10 = arith.constant 0 : index
    %c1_11 = arith.constant 1 : index
    %c0_12 = arith.constant 0 : index
    %4 = vector.load %arg1[%c0_8, %c0_9, %c0_10, %c1_11, %c0_12] : memref<4x2x9x9x4xbf16, #tpu.memory_space<vmem>>, vector<1x2x8x8x4xbf16>
    %5 = vector.shape_cast %4 : vector<1x2x8x8x4xbf16> to vector<2x8x8x4xbf16>
    %c2 = arith.constant 2 : index
    %c0_13 = arith.constant 0 : index
    %c0_14 = arith.constant 0 : index
    %c0_15 = arith.constant 0 : index
    %c0_16 = arith.constant 0 : index
    %6 = vector.load %arg1[%c2, %c0_13, %c0_14, %c0_15, %c0_16] : memref<4x2x9x9x4xbf16, #tpu.memory_space<vmem>>, vector<1x2x8x8x4xbf16>
    %7 = vector.shape_cast %6 : vector<1x2x8x8x4xbf16> to vector<2x8x8x4xbf16>
    %c3 = arith.constant 3 : index
    %c0_17 = arith.constant 0 : index
    %c0_18 = arith.constant 0 : index
    %c0_19 = arith.constant 0 : index
    %c0_20 = arith.constant 0 : index
    %8 = vector.load %arg1[%c3, %c0_17, %c0_18, %c0_19, %c0_20] : memref<4x2x9x9x4xbf16, #tpu.memory_space<vmem>>, vector<1x2x8x8x4xbf16>
    %9 = vector.shape_cast %8 : vector<1x2x8x8x4xbf16> to vector<2x8x8x4xbf16>
    %c2_21 = arith.constant 2 : index
    %c0_22 = arith.constant 0 : index
    %c0_23 = arith.constant 0 : index
    %c1_24 = arith.constant 1 : index
    %c0_25 = arith.constant 0 : index
    %10 = vector.load %arg1[%c2_21, %c0_22, %c0_23, %c1_24, %c0_25] : memref<4x2x9x9x4xbf16, #tpu.memory_space<vmem>>, vector<1x2x8x8x4xbf16>
    %11 = vector.shape_cast %10 : vector<1x2x8x8x4xbf16> to vector<2x8x8x4xbf16>
    %c0_26 = arith.constant 0 : index
    %c0_27 = arith.constant 0 : index
    %c1_28 = arith.constant 1 : index
    %c0_29 = arith.constant 0 : index
    %c0_30 = arith.constant 0 : index
    %12 = vector.load %arg1[%c0_26, %c0_27, %c1_28, %c0_29, %c0_30] : memref<4x2x9x9x4xbf16, #tpu.memory_space<vmem>>, vector<1x2x8x8x4xbf16>
    %13 = vector.shape_cast %12 : vector<1x2x8x8x4xbf16> to vector<2x8x8x4xbf16>
    %c1_31 = arith.constant 1 : index
    %c0_32 = arith.constant 0 : index
    %c1_33 = arith.constant 1 : index
    %c0_34 = arith.constant 0 : index
    %c0_35 = arith.constant 0 : index
    %14 = vector.load %arg1[%c1_31, %c0_32, %c1_33, %c0_34, %c0_35] : memref<4x2x9x9x4xbf16, #tpu.memory_space<vmem>>, vector<1x2x8x8x4xbf16>
    %15 = vector.shape_cast %14 : vector<1x2x8x8x4xbf16> to vector<2x8x8x4xbf16>
    %c0_36 = arith.constant 0 : index
    %c0_37 = arith.constant 0 : index
    %c1_38 = arith.constant 1 : index
    %c1_39 = arith.constant 1 : index
    %c0_40 = arith.constant 0 : index
    %16 = vector.load %arg1[%c0_36, %c0_37, %c1_38, %c1_39, %c0_40] : memref<4x2x9x9x4xbf16, #tpu.memory_space<vmem>>, vector<1x2x8x8x4xbf16>
    %17 = vector.shape_cast %16 : vector<1x2x8x8x4xbf16> to vector<2x8x8x4xbf16>
    %18 = tpu.concatenate %1, %3, %5, %7, %9, %11, %13, %15, %17 in 3 : vector<2x8x8x4xbf16>, vector<2x8x8x4xbf16>, vector<2x8x8x4xbf16>, vector<2x8x8x4xbf16>, vector<2x8x8x4xbf16>, vector<2x8x8x4xbf16>, vector<2x8x8x4xbf16>, vector<2x8x8x4xbf16>, vector<2x8x8x4xbf16> -> vector<2x8x8x36xbf16>
    %19 = vector.shape_cast %18 : vector<2x8x8x36xbf16> to vector<128x36xbf16>
    %c0_41 = arith.constant 0 : index
    %c0_42 = arith.constant 0 : index
    %20 = vector.load %arg2[%c0_41, %c0_42] : memref<36x128xbf16, #tpu.memory_space<vmem>>, vector<36x128xbf16>
    %cst = arith.constant dense<0.000000e+00> : vector<128x128xf32>
    %21 = tpu.matmul %19, %20, %cst {dimension_numbers = #tpu.dot_dimension_numbers<[1], [0], [0], [1], [0, 0, 1, 1], [], []>} : vector<128x36xbf16>, vector<36x128xbf16>, vector<128x128xf32> -> vector<128x128xf32>
    %c0_43 = arith.constant 0 : index
    %c0_44 = arith.constant 0 : index
    %22 = vector.load %arg3[%c0_43, %c0_44] : memref<1x128xf32, #tpu.memory_space<vmem>>, vector<1x128xf32>
    %23 = vector.broadcast %22 : vector<1x128xf32> to vector<128x128xf32>
    %24 = arith.mulf %21, %23 : vector<128x128xf32>
    %c0_45 = arith.constant 0 : index
    %c0_46 = arith.constant 0 : index
    %25 = vector.load %arg4[%c0_45, %c0_46] : memref<1x128xf32, #tpu.memory_space<vmem>>, vector<1x128xf32>
    %26 = vector.broadcast %25 : vector<1x128xf32> to vector<128x128xf32>
    %27 = arith.addf %24, %26 : vector<128x128xf32>
    %28 = vector.extract_strided_slice %27 {offsets = [0, 0], sizes = [128, 32], strides = [1, 1]} : vector<128x128xf32> to vector<128x32xf32>
    %29 = arith.truncf %28 : vector<128x32xf32> to vector<128x32xbf16>
    %30 = vector.shape_cast %29 : vector<128x32xbf16> to vector<2x64x32xbf16>
    %c0_47 = arith.constant 0 : index
    %c0_48 = arith.constant 0 : index
    %c0_49 = arith.constant 0 : index
    %31 = vector.load %arg5[%c0_47, %c0_48, %c0_49] : memref<2x64x32xbf16, #tpu.memory_space<vmem>>, vector<2x64x32xbf16>
    tpu.vector_store %arg5[%c0_47, %c0_48, %c0_49], %30 {strides = array<i32>} : memref<2x64x32xbf16, #tpu.memory_space<vmem>>, vector<2x64x32xbf16>,
    return
  }
  func.func @transform_0(%arg0: i32) -> (i32, i32, i32, i32, i32) {
    %c0_i32 = arith.constant 0 : i32
    %c0_i32_0 = arith.constant 0 : i32
    %c0_i32_1 = arith.constant 0 : i32
    %c0_i32_2 = arith.constant 0 : i32
    %c0_i32_3 = arith.constant 0 : i32
    return %c0_i32, %arg0, %c0_i32_0, %c0_i32_1, %c0_i32_2 : i32, i32, i32, i32, i32
  }
  func.func @transform_1(%arg0: i32) -> (i32, i32) {
    %c0_i32 = arith.constant 0 : i32
    %c0_i32_0 = arith.constant 0 : i32
    %c0_i32_1 = arith.constant 0 : i32
    return %c0_i32, %c0_i32_0 : i32, i32
  }
  func.func @transform_2(%arg0: i32) -> (i32, i32) {
    %c0_i32 = arith.constant 0 : i32
    %c0_i32_0 = arith.constant 0 : i32
    %c0_i32_1 = arith.constant 0 : i32
    return %c0_i32, %c0_i32_0 : i32, i32
  }
  func.func @transform_3(%arg0: i32) -> (i32, i32) {
    %c0_i32 = arith.constant 0 : i32
    %c0_i32_0 = arith.constant 0 : i32
    %c0_i32_1 = arith.constant 0 : i32
    return %c0_i32, %c0_i32_0 : i32, i32
  }
  func.func @transform_4(%arg0: i32) -> (i32, i32, i32) {
    %c0_i32 = arith.constant 0 : i32
    %c0_i32_0 = arith.constant 0 : i32
    %c0_i32_1 = arith.constant 0 : i32
    return %arg0, %c0_i32, %c0_i32_0 : i32, i32, i32
  }
}

</mosaic_0001>

<bundles_post_ra>
// kernel: tpu_custom_call.1
= control target key start
LH: loop header
LB: loop body
LE: loop exit
PB: predicated region body
PF: predicated region fallthrough
CT: control target
= control target key end

     0   :  { %s2859_s15 = smov 0   ;;  %s2861_s16 = smov 0   ;;  %s3859_s0 = inlined_call_operand.vmem [shape: bf16[4,4,9,9,4], index: 0, kind: input, shape index: {}]   ;;  %s3860_s1 = inlined_call_operand.vmem [shape: bf16[36,128], index: 1, kind: input, shape index: {}]   ;;  %s3861_s2 = inlined_call_operand.vmem [shape: f32[1,128], index: 2, kind: input, shape index: {}]   ;;  %s3862_s3 = inlined_call_operand.vmem [shape: f32[1,128], index: 3, kind: input, shape index: {}]   ;;  %s3863_s4 = inlined_call_operand.vmem [shape: bf16[4,64,32], index: 4, kind: output, shape index: {}]  }
   0x1   :  { %s2863_s17 = smov 0  }
   0x2 LB: > { %s2532_s18 = sadd.s32 4294967295, %s2824_s17   ;;  %s2876_s19 = sadd.s32 1, %s2824_s17   ;;  %s2824_s17 = sphi %s2863_s17, %s3866_s17   ;;  %s2820_s16 = sphi %s2861_s16, %s3865_s16   ;;  %s2816_s15 = sphi %s2859_s15, %s3864_s15  }
   0x3   : > { %s18_s20 = ssub.s32 %s2824_s17, %s2876_s19  ;;  %s21_s21 = sadd.s32 1, %s2820_s16 }
   0x4   : > { %p19_p0 = scmp.eq.s32.totalorder %s18_s20, 0  ;;  %p28_p1 = scmp.ne.s32.totalorder %s2820_s16, %s2816_s15 }
   0x5   : > { %p29_p2 = scmp.eq.s32.totalorder %s2824_s17, 0  ;;  %p2535_p4 = scmp.ge.s32.totalorder %s2824_s17, 2 }
   0x6   : > { %s2885_s22 = scalar_select %p19_p0, %s2820_s16, %s21_s21  }
   0x7   : > { %p30_p3 = por %p29_p2, %p28_p1  ;;  %152 = sbr.rel (%p2535_p4) target bundleno = 89 (0x59), region = 28 }
   0xc   : > { %155 = sbr.rel (!%p30_p3) target bundleno = 89 (0x59), region = 32  ;;  %s157_s23 = sand.u32 (%p30_p3), 1, %s2820_s16  }
   0xd   : > { %s2766_s24 = smul.u32 (%p30_p3), 144, %s2824_s17 }
   0xe   : > { %s2765_s25 = smul.u32 (%p30_p3), 576, %s157_s23 }
   0xf   : > { %s2893_s28 = scalar_lea.vmem (%p30_p3), %s3859_s0, %s2766_s24 }
  0x10   : > { %v180_v0 = vld [vmem:[%s2893_s28] sm:$0xff] (%p30_p3)   ;;  %v184_v1 = vld [vmem:[%s2893_s28 + $0x8] sm:$0xff] (%p30_p3)   ;;  %v188_v2 = vld [vmem:[%s2893_s28 + $0x10] sm:$0xff] (%p30_p3)   ;;  %s2898_s29 = scalar_lea.vmem (%p30_p3), [#allocation2], %s2765_s25 }
  0x11   : > { %181 = vst [vmem:[%s2898_s29] sm:$0xff] %v180_v0   ;;  %v192_v3 = vld [vmem:[%s2893_s28 + $0x18] sm:$0xff]   ;;  %v196_v4 = vld [vmem:[%s2893_s28 + $0x20] sm:$0xff]   ;;  %v200_v5 = vld [vmem:[%s2893_s28 + $0x28] sm:$0xff]  }
  0x12   : > { %185 = vst [vmem:[%s2898_s29 + $0x8] sm:$0xff] %v184_v1   ;;  %v204_v6 = vld [vmem:[%s2893_s28 + $0x30] sm:$0xff]   ;;  %v208_v7 = vld [vmem:[%s2893_s28 + $0x38] sm:$0xff]   ;;  %v212_v8 = vld [vmem:[%s2893_s28 + $0x40] sm:$0xff]  }
  0x13   : > { %189 = vst [vmem:[%s2898_s29 + $0x10] sm:$0xff] %v188_v2   ;;  %v216_v9 = vld [vmem:[%s2893_s28 + $0x48] sm:$0xff]   ;;  %v220_v10 = vld [vmem:[%s2893_s28 + $0x50] sm:$0xff]   ;;  %v224_v11 = vld [vmem:[%s2893_s28 + $0x58] sm:$0xff]  }
  0x14   : > { %193 = vst [vmem:[%s2898_s29 + $0x18] sm:$0xff] %v192_v3   ;;  %v228_v12 = vld [vmem:[%s2893_s28 + $0x60] sm:$0xff]   ;;  %v232_v13 = vld [vmem:[%s2893_s28 + $0x68] sm:$0xff]   ;;  %v236_v14 = vld [vmem:[%s2893_s28 + $0x70] sm:$0xff]  }
  0x15   : > { %197 = vst [vmem:[%s2898_s29 + $0x20] sm:$0xff] %v196_v4   ;;  %v240_v15 = vld [vmem:[%s2893_s28 + $0x78] sm:$0xff]   ;;  %v244_v16 = vld [vmem:[%s2893_s28 + $0x80] sm:$0xff]   ;;  %v248_v17 = vld [vmem:[%s2893_s28 + $0x88] sm:$0xff]  }
  0x16   : > { %201 = vst [vmem:[%s2898_s29 + $0x28] sm:$0xff] %v200_v5   ;;  %v252_v18 = vld [vmem:[%s2893_s28 + $0x120] sm:$0xff]   ;;  %v256_v19 = vld [vmem:[%s2893_s28 + $0x128] sm:$0xff]   ;;  %v260_v20 = vld [vmem:[%s2893_s28 + $0x130] sm:$0xff]  }
  0x17   : > { %205 = vst [vmem:[%s2898_s29 + $0x30] sm:$0xff] %v204_v6   ;;  %v264_v21 = vld [vmem:[%s2893_s28 + $0x138] sm:$0xff]   ;;  %v268_v22 = vld [vmem:[%s2893_s28 + $0x140] sm:$0xff]   ;;  %v272_v23 = vld [vmem:[%s2893_s28 + $0x148] sm:$0xff]  }
  0x18   : > { %209 = vst [vmem:[%s2898_s29 + $0x38] sm:$0xff] %v208_v7   ;;  %v276_v24 = vld [vmem:[%s2893_s28 + $0x150] sm:$0xff]   ;;  %v280_v25 = vld [vmem:[%s2893_s28 + $0x158] sm:$0xff]   ;;  %v284_v26 = vld [vmem:[%s2893_s28 + $0x160] sm:$0xff]  }
  0x19   : > { %213 = vst [vmem:[%s2898_s29 + $0x40] sm:$0xff] %v212_v8   ;;  %v288_v27 = vld [vmem:[%s2893_s28 + $0x168] sm:$0xff]   ;;  %v292_v28 = vld [vmem:[%s2893_s28 + $0x170] sm:$0xff]   ;;  %v296_v29 = vld [vmem:[%s2893_s28 + $0x178] sm:$0xff]  }
  0x1a   : > { %217 = vst [vmem:[%s2898_s29 + $0x48] sm:$0xff] %v216_v9   ;;  %v300_v30 = vld [vmem:[%s2893_s28 + $0x180] sm:$0xff]   ;;  %v304_v31 = vld [vmem:[%s2893_s28 + $0x188] sm:$0xff]   ;;  %v308_v32 = vld [vmem:[%s2893_s28 + $0x190] sm:$0xff]  }
  0x1b   : > { %221 = vst [vmem:[%s2898_s29 + $0x50] sm:$0xff] %v220_v10   ;;  %v312_v33 = vld [vmem:[%s2893_s28 + $0x198] sm:$0xff]   ;;  %v316_v34 = vld [vmem:[%s2893_s28 + $0x1a0] sm:$0xff]   ;;  %v320_v35 = vld [vmem:[%s2893_s28 + $0x1a8] sm:$0xff]  }
  0x1c   : > { %225 = vst [vmem:[%s2898_s29 + $0x58] sm:$0xff] %v224_v11   ;;  %v324_v36 = vld [vmem:[%s2893_s28 + $0x240] sm:$0xff]   ;;  %v328_v37 = vld [vmem:[%s2893_s28 + $0x248] sm:$0xff]   ;;  %v332_v38 = vld [vmem:[%s2893_s28 + $0x250] sm:$0xff]  }
  0x1d   : > { %229 = vst [vmem:[%s2898_s29 + $0x60] sm:$0xff] %v228_v12   ;;  %v336_v39 = vld [vmem:[%s2893_s28 + $0x258] sm:$0xff]   ;;  %v340_v40 = vld [vmem:[%s2893_s28 + $0x260] sm:$0xff]   ;;  %v344_v41 = vld [vmem:[%s2893_s28 + $0x268] sm:$0xff]  }
  0x1e   : > { %233 = vst [vmem:[%s2898_s29 + $0x68] sm:$0xff] %v232_v13   ;;  %v348_v42 = vld [vmem:[%s2893_s28 + $0x270] sm:$0xff]   ;;  %v352_v43 = vld [vmem:[%s2893_s28 + $0x278] sm:$0xff]   ;;  %v356_v44 = vld [vmem:[%s2893_s28 + $0x280] sm:$0xff]  }
  0x1f   : > { %237 = vst [vmem:[%s2898_s29 + $0x70] sm:$0xff] %v236_v14   ;;  %v360_v45 = vld [vmem:[%s2893_s28 + $0x288] sm:$0xff]   ;;  %v364_v46 = vld [vmem:[%s2893_s28 + $0x290] sm:$0xff]   ;;  %v368_v47 = vld [vmem:[%s2893_s28 + $0x298] sm:$0xff]  }
  0x20   : > { %241 = vst [vmem:[%s2898_s29 + $0x78] sm:$0xff] %v240_v15   ;;  %v372_v48 = vld [vmem:[%s2893_s28 + $0x2a0] sm:$0xff]   ;;  %v376_v49 = vld [vmem:[%s2893_s28 + $0x2a8] sm:$0xff]   ;;  %v380_v50 = vld [vmem:[%s2893_s28 + $0x2b0] sm:$0xff]  }
  0x21   : > { %245 = vst [vmem:[%s2898_s29 + $0x80] sm:$0xff] %v244_v16   ;;  %v384_v51 = vld [vmem:[%s2893_s28 + $0x2b8] sm:$0xff]   ;;  %v388_v52 = vld [vmem:[%s2893_s28 + $0x2c0] sm:$0xff]   ;;  %v392_v53 = vld [vmem:[%s2893_s28 + $0x2c8] sm:$0xff]  }
  0x22   : > { %249 = vst [vmem:[%s2898_s29 + $0x88] sm:$0xff] %v248_v17   ;;  %v396_v54 = vld [vmem:[%s2893_s28 + $0x360] sm:$0xff]   ;;  %v400_v55 = vld [vmem:[%s2893_s28 + $0x368] sm:$0xff]   ;;  %v404_v56 = vld [vmem:[%s2893_s28 + $0x370] sm:$0xff]  }
  0x23   : > { %253 = vst [vmem:[%s2898_s29 + $0x90] sm:$0xff] %v252_v18   ;;  %v408_v57 = vld [vmem:[%s2893_s28 + $0x378] sm:$0xff]   ;;  %v412_v58 = vld [vmem:[%s2893_s28 + $0x380] sm:$0xff]   ;;  %v416_v59 = vld [vmem:[%s2893_s28 + $0x388] sm:$0xff]  }
  0x24   : > { %257 = vst [vmem:[%s2898_s29 + $0x98] sm:$0xff] %v256_v19   ;;  %v420_v60 = vld [vmem:[%s2893_s28 + $0x390] sm:$0xff]   ;;  %v424_v61 = vld [vmem:[%s2893_s28 + $0x398] sm:$0xff]   ;;  %v428_v62 = vld [vmem:[%s2893_s28 + $0x3a0] sm:$0xff]  }
  0x25   : > { %261 = vst [vmem:[%s2898_s29 + $0xa0] sm:$0xff] %v260_v20   ;;  %v432_v63 = vld [vmem:[%s2893_s28 + $0x3a8] sm:$0xff]   ;;  %v436_v0 = vld [vmem:[%s2893_s28 + $0x3b0] sm:$0xff]   ;;  %v440_v1 = vld [vmem:[%s2893_s28 + $0x3b8] sm:$0xff]  }
  0x26   : > { %265 = vst [vmem:[%s2898_s29 + $0xa8] sm:$0xff] %v264_v21   ;;  %v444_v2 = vld [vmem:[%s2893_s28 + $0x3c0] sm:$0xff]   ;;  %v448_v3 = vld [vmem:[%s2893_s28 + $0x3c8] sm:$0xff]   ;;  %v452_v4 = vld [vmem:[%s2893_s28 + $0x3d0] sm:$0xff]  }
  0x27   : > { %269 = vst [vmem:[%s2898_s29 + $0xb0] sm:$0xff] %v268_v22   ;;  %v456_v5 = vld [vmem:[%s2893_s28 + $0x3d8] sm:$0xff]   ;;  %v460_v6 = vld [vmem:[%s2893_s28 + $0x3e0] sm:$0xff]   ;;  %v464_v7 = vld [vmem:[%s2893_s28 + $0x3e8] sm:$0xff]  }
  0x28   : > { %273 = vst [vmem:[%s2898_s29 + $0xb8] sm:$0xff] %v272_v23  }
  0x29   : > { %277 = vst [vmem:[%s2898_s29 + $0xc0] sm:$0xff] %v276_v24  }
  0x2a   : > { %281 = vst [vmem:[%s2898_s29 + $0xc8] sm:$0xff] %v280_v25  }
  0x2b   : > { %285 = vst [vmem:[%s2898_s29 + $0xd0] sm:$0xff] %v284_v26  }
  0x2c   : > { %289 = vst [vmem:[%s2898_s29 + $0xd8] sm:$0xff] %v288_v27  }
  0x2d   : > { %293 = vst [vmem:[%s2898_s29 + $0xe0] sm:$0xff] %v292_v28  }
  0x2e   : > { %297 = vst [vmem:[%s2898_s29 + $0xe8] sm:$0xff] %v296_v29  }
  0x2f   : > { %301 = vst [vmem:[%s2898_s29 + $0xf0] sm:$0xff] %v300_v30  }
  0x30   : > { %305 = vst [vmem:[%s2898_s29 + $0xf8] sm:$0xff] %v304_v31  }
  0x31   : > { %309 = vst [vmem:[%s2898_s29 + $0x100] sm:$0xff] %v308_v32  }
  0x32   : > { %313 = vst [vmem:[%s2898_s29 + $0x108] sm:$0xff] %v312_v33  }
  0x33   : > { %317 = vst [vmem:[%s2898_s29 + $0x110] sm:$0xff] %v316_v34  }
  0x34   : > { %321 = vst [vmem:[%s2898_s29 + $0x118] sm:$0xff] %v320_v35  }
  0x35   : > { %325 = vst [vmem:[%s2898_s29 + $0x120] sm:$0xff] %v324_v36  }
  0x36   : > { %329 = vst [vmem:[%s2898_s29 + $0x128] sm:$0xff] %v328_v37  }
  0x37   : > { %333 = vst [vmem:[%s2898_s29 + $0x130] sm:$0xff] %v332_v38  }
  0x38   : > { %337 = vst [vmem:[%s2898_s29 + $0x138] sm:$0xff] %v336_v39  }
  0x39   : > { %341 = vst [vmem:[%s2898_s29 + $0x140] sm:$0xff] %v340_v40  }
  0x3a   : > { %345 = vst [vmem:[%s2898_s29 + $0x148] sm:$0xff] %v344_v41  }
  0x3b   : > { %349 = vst [vmem:[%s2898_s29 + $0x150] sm:$0xff] %v348_v42  }
  0x3c   : > { %353 = vst [vmem:[%s2898_s29 + $0x158] sm:$0xff] %v352_v43  }
  0x3d   : > { %357 = vst [vmem:[%s2898_s29 + $0x160] sm:$0xff] %v356_v44  }
  0x3e   : > { %361 = vst [vmem:[%s2898_s29 + $0x168] sm:$0xff] %v360_v45  }
  0x3f   : > { %365 = vst [vmem:[%s2898_s29 + $0x170] sm:$0xff] %v364_v46  }
  0x40   : > { %369 = vst [vmem:[%s2898_s29 + $0x178] sm:$0xff] %v368_v47  }
  0x41   : > { %373 = vst [vmem:[%s2898_s29 + $0x180] sm:$0xff] %v372_v48  }
  0x42   : > { %377 = vst [vmem:[%s2898_s29 + $0x188] sm:$0xff] %v376_v49  }
  0x43   : > { %381 = vst [vmem:[%s2898_s29 + $0x190] sm:$0xff] %v380_v50  }
  0x44   : > { %385 = vst [vmem:[%s2898_s29 + $0x198] sm:$0xff] %v384_v51  }
  0x45   : > { %389 = vst [vmem:[%s2898_s29 + $0x1a0] sm:$0xff] %v388_v52  }
  0x46   : > { %393 = vst [vmem:[%s2898_s29 + $0x1a8] sm:$0xff] %v392_v53  }
  0x47   : > { %397 = vst [vmem:[%s2898_s29 + $0x1b0] sm:$0xff] %v396_v54  }
  0x48   : > { %401 = vst [vmem:[%s2898_s29 + $0x1b8] sm:$0xff] %v400_v55  }
  0x49   : > { %405 = vst [vmem:[%s2898_s29 + $0x1c0] sm:$0xff] %v404_v56  }
  0x4a   : > { %409 = vst [vmem:[%s2898_s29 + $0x1c8] sm:$0xff] %v408_v57  }
  0x4b   : > { %413 = vst [vmem:[%s2898_s29 + $0x1d0] sm:$0xff] %v412_v58  }
  0x4c   : > { %417 = vst [vmem:[%s2898_s29 + $0x1d8] sm:$0xff] %v416_v59  }
  0x4d   : > { %421 = vst [vmem:[%s2898_s29 + $0x1e0] sm:$0xff] %v420_v60  }
  0x4e   : > { %425 = vst [vmem:[%s2898_s29 + $0x1e8] sm:$0xff] %v424_v61  }
  0x4f   : > { %429 = vst [vmem:[%s2898_s29 + $0x1f0] sm:$0xff] %v428_v62  }
  0x50   : > { %433 = vst [vmem:[%s2898_s29 + $0x1f8] sm:$0xff] %v432_v63  }
  0x51   : > { %437 = vst [vmem:[%s2898_s29 + $0x200] sm:$0xff] %v436_v0  }
  0x52   : > { %441 = vst [vmem:[%s2898_s29 + $0x208] sm:$0xff] %v440_v1  }
  0x53   : > { %445 = vst [vmem:[%s2898_s29 + $0x210] sm:$0xff] %v444_v2  }
  0x54   : > { %449 = vst [vmem:[%s2898_s29 + $0x218] sm:$0xff] %v448_v3  }
  0x55   : > { %453 = vst [vmem:[%s2898_s29 + $0x220] sm:$0xff] %v452_v4  }
  0x56   : > { %457 = vst [vmem:[%s2898_s29 + $0x228] sm:$0xff] %v456_v5  }
  0x57   : > { %461 = vst [vmem:[%s2898_s29 + $0x230] sm:$0xff] %v460_v6  }
  0x58   : > { %465 = vst [vmem:[%s2898_s29 + $0x238] sm:$0xff] %v464_v7  }
  0x59 PF: > { %p2539_p5 = scmp.ge.s32.totalorder %s2824_s17, 1  ;;  %p778_p6 = scmp.lt.s32.totalorder %s2824_s17, 3 }
  0x5b   : > { %p779_p7 = pnand %p2539_p5, %p778_p6 }
  0x5c   : > { %s785_s30 = sand.u32 (!%p779_p7), 1, %s2816_s15   ;;  %s2826_s7 = smov (!%p779_p7), 4  }
  0x5d   : > { %782 = sbr.rel (%p779_p7) target bundleno = 701 (0x2bd), region = 73  ;;  %s2827_s8 = smov (!%p779_p7), 8  }
  0x5e   : > { %s2767_s5 = smul.u32 (!%p779_p7), 576, %s785_s30  ;;  %s2828_s9 = smov (!%p779_p7), 12  }
  0x5f   : > { %s2829_s10 = smov (!%p779_p7), 16   ;;  %s2830_s11 = smov (!%p779_p7), 20  }
  0x60   : > { %s3044_s6 = scalar_lea.vmem (!%p779_p7), [#allocation2], %s2767_s5  ;;  %s2831_s12 = smov (!%p779_p7), 24  }
  0x61   : > { %s2832_s13 = smov (!%p779_p7), 28   ;;  %s2833_s14 = smov (!%p779_p7), 32  }
  0x62   : > { %v2547_v8 = vld [vmem:[%s3044_s6 + $0xb0] sm:$0xf]  ;;  %v2545_v9 = vld [vmem:[%s3044_s6 + $0xa0] sm:$0xf]  ;;  %v2548_v14 = vld [vmem:[%s3044_s6 + $0xb8] sm:$0xf] }
  0x63   : > { %v2543_v10 = vld [vmem:[%s3044_s6 + $0x90] sm:$0xf]  ;;  %v989_v11 = vunpack.c.l.b16 %v2547_v8  ;;  %v987_v12 = vunpack.c.l.b16 %v2545_v9  ;;  %v2546_v15 = vld [vmem:[%s3044_s6 + $0xa8] sm:$0xf]  ;;  %v2544_v19 = vld [vmem:[%s3044_s6 + $0x98] sm:$0xf]  ;;  %v990_v20 = vunpack.c.l.b16 %v2548_v14 }
  0x64   : > { %v985_v13 = vunpack.c.l.b16 %v2543_v10  ;;  %v988_v21 = vunpack.c.l.b16 %v2546_v15  ;;  %v986_v22 = vunpack.c.l.b16 %v2544_v19  ;;  %v2551_v26 = vld [vmem:[%s3044_s6 + $0xd8] sm:$0xf]  ;;  %v2550_v27 = vld [vmem:[%s3044_s6 + $0xc8] sm:$0xf]  ;;  %v2549_v28 = vld [vmem:[%s3044_s6 + $0xc0] sm:$0xf] }
  0x65   : > { %v1005_v16 = vpack.c.b16 %v989_v11, %v989_v11  ;;  %v1003_v17 = vpack.c.b16 %v987_v12, %v987_v12  ;;  %v1006_v23 = vpack.c.b16 %v990_v20, %v990_v20  ;;  %v993_v29 = vunpack.c.l.b16 %v2551_v26  ;;  %v2554_v35 = vld [vmem:[%s3044_s6 + $0xf0] sm:$0xf]  ;;  %v2553_v36 = vld [vmem:[%s3044_s6 + $0xe8] sm:$0xf]  ;;  %v2552_v37 = vld [vmem:[%s3044_s6 + $0xe0] sm:$0xf] }
  0x66   : > { %v1001_v18 = vpack.c.b16 %v985_v13, %v985_v13  ;;  %v1004_v24 = vpack.c.b16 %v988_v21, %v988_v21  ;;  %v1002_v25 = vpack.c.b16 %v986_v22, %v986_v22  ;;  %v992_v30 = vunpack.c.l.b16 %v2550_v27  ;;  %v2557_v43 = vld [vmem:[%s3044_s6 + $0x108] sm:$0xf]  ;;  %v2556_v44 = vld [vmem:[%s3044_s6 + $0x100] sm:$0xf]  ;;  %v2739_v47 = vld [vmem:[%s3044_s6 + $0x8] sm:$0x10] }
  0x67   : > { %1025 = vrot.lane.b32.xlu2 %v1005_v16, %s2826_s7  ;;  %1021 = vrot.lane.b32.xlu1 %v1003_v17, %s2826_s7  ;;  %v991_v31 = vunpack.c.l.b16 %v2549_v28  ;;  %v1009_v32 = vpack.c.b16 %v993_v29, %v993_v29  ;;  %v996_v38 = vunpack.c.l.b16 %v2554_v35  ;;  %v995_v39 = vunpack.c.l.b16 %v2553_v36  ;;  %v2661_v45 = vld [vmem:[%s3044_s6 + $0x8] sm:$0xf]  ;;  %v2657_v48 = vld [vmem:[%s3044_s6] sm:$0xf]  ;;  %s2540_s26 = sshll.u32 %s2532_s18, 1 }
  0x68   : > { %1017 = vrot.lane.b32.xlu0 %v1001_v18, %s2826_s7  ;;  %v1008_v33 = vpack.c.b16 %v992_v30, %v992_v30  ;;  %v994_v40 = vunpack.c.l.b16 %v2552_v37  ;;  %v2738_v49 = vld [vmem:[%s3044_s6] sm:$0x10]  ;;  %v2555_v50 = vld [vmem:[%s3044_s6 + $0xf8] sm:$0xf]  ;;  %v999_v51 = vunpack.c.l.b16 %v2557_v43  ;;  %v998_v52 = vunpack.c.l.b16 %v2556_v44  ;;  %v2673_v56 = vld [vmem:[%s3044_s6 + $0x20] sm:$0xf] }
  0x69   : > { %v1007_v34 = vpack.c.b16 %v991_v31, %v991_v31  ;;  %v1012_v41 = vpack.c.b16 %v996_v38, %v996_v38  ;;  %v1011_v42 = vpack.c.b16 %v995_v39, %v995_v39  ;;  %v2662_v53 = vor.u32 %v2739_v47, %v2661_v45  ;;  %v2742_v57 = vld [vmem:[%s3044_s6 + $0x20] sm:$0x10]  ;;  %v2669_v58 = vld [vmem:[%s3044_s6 + $0x18] sm:$0xf]  ;;  %v2741_v59 = vld [vmem:[%s3044_s6 + $0x18] sm:$0x10] }
  0x6a   : > { %v1010_v46 = vpack.c.b16 %v994_v40, %v994_v40  ;;  %v2658_v54 = vor.u32 %v2738_v49, %v2657_v48  ;;  %v997_v55 = vunpack.c.l.b16 %v2555_v50  ;;  %v1015_v60 = vpack.c.b16 %v999_v51, %v999_v51  ;;  %v2558_v1 = vld [vmem:[%s3044_s6 + $0x110] sm:$0xf]  ;;  %v2740_v3 = vld [vmem:[%s3044_s6 + $0x10] sm:$0x10]  ;;  %v2677_v14 = vld [vmem:[%s3044_s6 + $0x28] sm:$0xf] }
  0x6b   : > { %v1014_v61 = vpack.c.b16 %v998_v52, %v998_v52  ;;  %v1139_v62 = vshll.u32 %v2662_v53, 16  ;;  %v2665_v2 = vld [vmem:[%s3044_s6 + $0x10] sm:$0xf]  ;;  %v2674_v4 = vor.u32 %v2742_v57, %v2673_v56  ;;  %v2670_v5 = vor.u32 %v2741_v59, %v2669_v58  ;;  %v2743_v15 = vld [vmem:[%s3044_s6 + $0x28] sm:$0x10]  ;;  %p813_p8 = scmp.lt.s32.totalorder %s2540_s26, 3 }
  0x6c   : > { %v1132_v63 = vshll.u32 %v2658_v54, 16  ;;  %v1013_v0 = vpack.c.b16 %v997_v55, %v997_v55  ;;  %v1137_v6 = vshrl.u32 %v2662_v53, 16  ;;  %v1130_v8 = vshrl.u32 %v2658_v54, 16  ;;  %v2685_v16 = vld [vmem:[%s3044_s6 + $0x38] sm:$0xf] }
  0x6d   : > { %v1141_v7 = vrot.slane %v1139_v62, 1  ;;  %v1000_v10 = vunpack.c.l.b16 %v2558_v1  ;;  %v2666_v11 = vor.u32 %v2740_v3, %v2665_v2  ;;  %v1160_v12 = vshll.u32 %v2674_v4, 16  ;;  %v2745_v19 = vld [vmem:[%s3044_s6 + $0x38] sm:$0x10]  ;;  %v2681_v20 = vld [vmem:[%s3044_s6 + $0x30] sm:$0xf] }
  0x6e   : > { %v1134_v9 = vrot.slane %v1132_v63, 1  ;;  %v1153_v13 = vshll.u32 %v2670_v5, 16  ;;  %v2744_v21 = vld [vmem:[%s3044_s6 + $0x30] sm:$0x10]  ;;  %v1158_v27 = vshrl.u32 %v2674_v4, 16  ;;  %v1151_v29 = vshrl.u32 %v2670_v5, 16 }
  0x6f   : > { %1027 = vrot.lane.b32.xlu2 %v1006_v23, %s2826_s7  ;;  %1023 = vrot.lane.b32.xlu1 %v1004_v24, %s2826_s7  ;;  %v1142_v17 = vor.u32 %v1141_v7, %v1137_v6  ;;  %v1016_v22 = vpack.c.b16 %v1000_v10, %v1000_v10  ;;  %v1146_v23 = vshll.u32 %v2666_v11, 16  ;;  %v2678_v24 = vor.u32 %v2743_v15, %v2677_v14  ;;  %v2689_v38 = vld [vmem:[%s3044_s6 + $0x48] sm:$0xf]  ;;  %v2746_v39 = vld [vmem:[%s3044_s6 + $0x48] sm:$0x10]  ;;  %s3868_s26 = smov (!%p813_p8, %s2540_s26), 3 }
  0x70   : > { %1019 = vrot.lane.b32.xlu0 %v1002_v25, %s2826_s7  ;;  %v1135_v18 = vor.u32 %v1134_v9, %v1130_v8  ;;  %v2686_v25 = vor.u32 %v2745_v19, %v2685_v16  ;;  %v2682_v26 = vor.u32 %v2744_v21, %v2681_v20  ;;  %v1162_v28 = vrot.slane %v1160_v12, 1  ;;  %v2697_v40 = vld [vmem:[%s3044_s6 + $0x58] sm:$0xf]  ;;  %v2693_v43 = vld [vmem:[%s3044_s6 + $0x50] sm:$0xf]  ;;  %s2737_s5 = sshll.u32 %s3868_s26, 5 }
  0x71   : > { %v1155_v30 = vrot.slane %v1153_v13, 1  ;;  %v1144_v31 = vshrl.u32 %v2666_v11, 16  ;;  %v2747_v44 = vld [vmem:[%s3044_s6 + $0x50] sm:$0x10]  ;;  %v2690_v49 = vor.u32 %v2746_v39, %v2689_v38  ;;  %v1165_v52 = vshrl.u32 %v2678_v24, 16 }
  0x72   : > { %v1174_v35 = vshll.u32 %v2682_v26, 16  ;;  %v1163_v36 = vor.u32 %v1162_v28, %v1158_v27  ;;  %v1179_v45 = vshrl.u32 %v2686_v25, 16  ;;  %v1172_v47 = vshrl.u32 %v2682_v26, 16  ;;  %v2709_v59 = vld [vmem:[%s3044_s6 + $0x70] sm:$0xf] }
  0x73   : > { %v1156_v37 = vor.u32 %v1155_v30, %v1151_v29  ;;  %v2694_v51 = vor.u32 %v2747_v44, %v2693_v43  ;;  %v1188_v56 = vshll.u32 %v2690_v49, 16  ;;  %v2705_v62 = vld [vmem:[%s3044_s6 + $0x68] sm:$0xf]  ;;  %v2750_v63 = vld [vmem:[%s3044_s6 + $0x68] sm:$0x10]  ;;  %v1186_v8 = vshrl.u32 %v2690_v49, 16 }
  0x74   : > { %v1176_v48 = vrot.slane %v1174_v35, 1  ;;  %v2749_v1 = vld [vmem:[%s3044_s6 + $0x60] sm:$0x10]  ;;  %v2706_v7 = vor.u32 %v2750_v63, %v2705_v62  ;;  %v2713_v19 = vld [vmem:[%s3044_s6 + $0x78] sm:$0xf]  ;;  %vm2026_vm0 = vcmask 64512  }
  0x75   : > { %v1195_v58 = vshll.u32 %v2694_v51, 16  ;;  %v1193_v3 = vshrl.u32 %v2694_v51, 16  ;;  %v1190_v9 = vrot.slane %v1188_v56, 1  ;;  %v2752_v20 = vld [vmem:[%s3044_s6 + $0x78] sm:$0x10]  ;;  %vm1977_vm1 = vcmask 31744  }
  0x76   : > { %v1177_v55 = vor.u32 %v1176_v48, %v1172_v47  ;;  %v1216_v14 = vshll.u32 %v2706_v7, 16  ;;  %v2714_v28 = vor.u32 %v2752_v20, %v2713_v19  ;;  %v2562_v43 = vld [vmem:[%s3044_s6 + $0x138] sm:$0xf]  ;;  %v2561_v44 = vld [vmem:[%s3044_s6 + $0x130] sm:$0xf]  ;;  %vm2059_vm2 = vcmask 97280  }
  0x77   : > { %1033 = vrot.lane.b32.xlu2 %v1009_v32, %s2826_s7  ;;  %1031 = vrot.lane.b32.xlu1 %v1008_v33, %s2826_s7  ;;  %v1148_v32 = vrot.slane %v1146_v23, 1  ;;  %v1167_v33 = vshll.u32 %v2678_v24, 16  ;;  %v1197_v5 = vrot.slane %v1195_v58, 1  ;;  %v1191_v15 = vor.u32 %v1190_v9, %v1186_v8  ;;  %v2568_v62 = vld [vmem:[%s3044_s6 + $0x170] sm:$0xf] }
  0x78   : > { %1029 = vrot.lane.b32.xlu0 %v1007_v34, %s2826_s7  ;;  %v1181_v34 = vshll.u32 %v2686_v25, 16  ;;  %v1214_v23 = vshrl.u32 %v2706_v7, 16  ;;  %v1218_v24 = vrot.slane %v1216_v14, 1  ;;  %v1228_v38 = vshrl.u32 %v2714_v28, 16  ;;  %v2567_v63 = vld [vmem:[%s3044_s6 + $0x168] sm:$0xf] }
  0x79   : > { %v1169_v53 = vrot.slane %v1167_v33, 1  ;;  %v1198_v12 = vor.u32 %v1197_v5, %v1193_v3  ;;  %v1230_v33 = vshll.u32 %v2714_v28, 16  ;;  %v3136_v47 = vunpack.c.l.b16 %v2561_v44  ;;  %v2571_v8 = vld [vmem:[%s3044_s6 + $0x188] sm:$0xf]  ;;  %v2570_v9 = vld [vmem:[%s3044_s6 + $0x180] sm:$0xf] }
  0x7a   : > { %v1219_v30 = vor.u32 %v1218_v24, %v1214_v23  ;;  %v2573_v19 = vld [vmem:[%s3044_s6 + $0x198] sm:$0xf]  ;;  %v2572_v20 = vld [vmem:[%s3044_s6 + $0x190] sm:$0xf]  ;;  %vm2092_vm3 = vcmask 130048   ;;  %vm2342_vm4 = vcmask 1041408  }
  0x7b   : > { %v1232_v39 = vrot.slane %v1230_v33, 1  ;;  %v3217_v23 = vunpack.c.l.b16 %v2572_v20  ;;  %v2579_v44 = vld [vmem:[%s3044_s6 + $0x1d0] sm:$0xf]  ;;  %vm2125_vm5 = vcmask 162816   ;;  %vm2158_vm6 = vcmask 195584  }
  0x7c   : > { %vm2191_vm7 = vcmask 228352   ;;  %vm2224_vm8 = vcmask 261120   ;;  %vm2317_vm9 = vcmask 293888   ;;  %vm2451_vm10 = vcmask 257024  }
  0x7f   : > { %1039 = vrot.lane.b32.xlu2 %v1012_v41, %s2826_s7  ;;  %1037 = vrot.lane.b32.xlu1 %v1011_v42, %s2826_s7  ;;  %v1149_v41 = vor.u32 %v1148_v32, %v1144_v31  ;;  %v2748_v42 = vld [vmem:[%s3044_s6 + $0x58] sm:$0x10] }
  0x80   : > { %1035 = vrot.lane.b32.xlu0 %v1010_v46, %s2826_s7  ;;  %v1183_v46 = vrot.slane %v1181_v34, 1  ;;  %v2698_v50 = vor.u32 %v2748_v42, %v2697_v40  ;;  %v2559_v34 = vld [vmem:[%s3044_s6 + $0x120] sm:$0xf]  ;;  %v1233_v42 = vor.u32 %v1232_v39, %v1228_v38 }
  0x81   : > { %v3124_v35 = vunpack.c.l.b16 %v2559_v34 }
  0x82   : > { %v1184_v54 = vor.u32 %v1183_v46, %v1179_v45  ;;  %v1202_v57 = vshll.u32 %v2698_v50, 16  ;;  %v1200_v2 = vshrl.u32 %v2698_v50, 16  ;;  %v2560_v45 = vld [vmem:[%s3044_s6 + $0x128] sm:$0xf]  ;;  %v3134_v46 = vunpack.c.l.b16 %v2562_v43  ;;  %v2580_v43 = vld [vmem:[%s3044_s6 + $0x1d8] sm:$0xf] }
  0x83   : > { %v1305_v40 = vpack.c.b16 %v3124_v35, %v3124_v35  ;;  %v3139_v48 = vunpack.c.l.b16 %v2560_v45  ;;  %v1307_v50 = vpack.c.b16 %v3136_v47, %v3136_v47  ;;  %v2578_v45 = vld [vmem:[%s3044_s6 + $0x1c8] sm:$0xf] }
  0x84   : > { %v1204_v4 = vrot.slane %v1202_v57, 1  ;;  %v1308_v49 = vpack.c.b16 %v3134_v46, %v3134_v46 }
  0x85   : > { %v1306_v51 = vpack.c.b16 %v3139_v48, %v3139_v48 }
  0x86   : > { %v1205_v11 = vor.u32 %v1204_v4, %v1200_v2  ;;  %v3174_v2 = vunpack.c.l.b16 %v2567_v63 }
  0x87   : > { %1045 = vrot.lane.b32.xlu2 %v1015_v60, %s2826_s7  ;;  %1043 = vrot.lane.b32.xlu1 %v1014_v61, %s2826_s7  ;;  %v1170_v60 = vor.u32 %v1169_v53, %v1165_v52  ;;  %v2751_v61 = vld [vmem:[%s3044_s6 + $0x70] sm:$0x10]  ;;  %v2565_v52 = vld [vmem:[%s3044_s6 + $0x150] sm:$0xf] }
  0x88   : > { %1041 = vrot.lane.b32.xlu0 %v1013_v0, %s2826_s7  ;;  %v2701_v0 = vld [vmem:[%s3044_s6 + $0x60] sm:$0xf]  ;;  %v2710_v6 = vor.u32 %v2751_v61, %v2709_v59  ;;  %v2564_v53 = vld [vmem:[%s3044_s6 + $0x148] sm:$0xf] }
  0x89   : > { %v2702_v10 = vor.u32 %v2749_v1, %v2701_v0  ;;  %v3154_v56 = vunpack.c.l.b16 %v2564_v53  ;;  %v2566_v0 = vld [vmem:[%s3044_s6 + $0x158] sm:$0xf]  ;;  %v3172_v1 = vunpack.c.l.b16 %v2568_v62 }
  0x8a   : > { %v1223_v13 = vshll.u32 %v2710_v6, 16  ;;  %v1221_v21 = vshrl.u32 %v2710_v6, 16  ;;  %v3177_v3 = vunpack.c.l.b16 %v2566_v0  ;;  %v1313_v6 = vpack.c.b16 %v3174_v2, %v3174_v2 }
  0x8b   : > { %v1209_v16 = vshll.u32 %v2702_v10, 16  ;;  %v1207_v26 = vshrl.u32 %v2702_v10, 16  ;;  %v1314_v5 = vpack.c.b16 %v3172_v1, %v3172_v1  ;;  %v2569_v10 = vld [vmem:[%s3044_s6 + $0x178] sm:$0xf] }
  0x8c   : > { %v1312_v7 = vpack.c.b16 %v3177_v3, %v3177_v3 }
  0x8d   : > { %v1211_v27 = vrot.slane %v1209_v16, 1 }
  0x8f   : > { %1243 = vrot.lane.b32.xlu2 %v1142_v17, %s2827_s8  ;;  %1241 = vrot.lane.b32.xlu1 %v1135_v18, %s2827_s8  ;;  %v2717_v17 = vld [vmem:[%s3044_s6 + $0x80] sm:$0xf]  ;;  %v2753_v18 = vld [vmem:[%s3044_s6 + $0x80] sm:$0x10]  ;;  %v1212_v32 = vor.u32 %v1211_v27, %v1207_v26 }
  0x90   : > { %1047 = vrot.lane.b32.xlu0 %v1016_v22, %s2826_s7  ;;  %v1225_v22 = vrot.slane %v1223_v13, 1  ;;  %v2718_v25 = vor.u32 %v2753_v18, %v2717_v17  ;;  %v3197_v13 = vunpack.c.l.b16 %v2569_v10  ;;  %v2574_v18 = vld [vmem:[%s3044_s6 + $0x1a0] sm:$0xf] }
  0x92   : > { %v1226_v29 = vor.u32 %v1225_v22, %v1221_v21  ;;  %v1237_v31 = vshll.u32 %v2718_v25, 16  ;;  %v1315_v17 = vpack.c.b16 %v3197_v13, %v3197_v13  ;;  %v3212_v21 = vunpack.c.l.b16 %v2574_v18 }
  0x93   : > { %v3214_v22 = vunpack.c.l.b16 %v2573_v19 }
  0x94   : > { %v1320_v27 = vpack.c.b16 %v3212_v21, %v3212_v21 }
  0x95   : > { %v1319_v28 = vpack.c.b16 %v3214_v22, %v3214_v22 }
  0x97   : > { %1249 = vrot.lane.b32.xlu2 %v1163_v36, %s2827_s8  ;;  %1247 = vrot.lane.b32.xlu1 %v1156_v37, %s2827_s8  ;;  %v1235_v36 = vshrl.u32 %v2718_v25, 16  ;;  %v1239_v37 = vrot.slane %v1237_v31, 1  ;;  %v2576_v31 = vld [vmem:[%s3044_s6 + $0x1b8] sm:$0xf] }
  0x98   : > { %1245 = vrot.lane.b32.xlu0 %v1149_v41, %s2827_s8  ;;  %v1370_v34 = vunpack.c.l.b16 %v2576_v31 }
  0x99   : > { %v1240_v41 = vor.u32 %v1239_v37, %v1235_v36 }
  0x9f   : > { %1255 = vrot.lane.b32.xlu2 %v1184_v54, %s2827_s8  ;;  %1253 = vrot.lane.b32.xlu1 %v1177_v55, %s2827_s8  ;;  %v2563_v54 = vld [vmem:[%s3044_s6 + $0x140] sm:$0xf]  ;;  %v3152_v55 = vunpack.c.l.b16 %v2565_v52  ;;  %v1372_v52 = vunpack.c.l.b16 %v2578_v45 }
  0xa0   : > { %1251 = vrot.lane.b32.xlu0 %v1170_v60, %s2827_s8  ;;  %v3157_v57 = vunpack.c.l.b16 %v2563_v54  ;;  %v1310_v60 = vpack.c.b16 %v3154_v56, %v3154_v56 }
  0xa1   : > { %v1311_v59 = vpack.c.b16 %v3152_v55, %v3152_v55  ;;  %v1388_v0 = vpack.c.b16 %v1372_v52, %v1372_v52 }
  0xa2   : > { %v1309_v61 = vpack.c.b16 %v3157_v57, %v3157_v57 }
  0xa7   : > { %1261 = vrot.lane.b32.xlu2 %v1205_v11, %s2827_s8  ;;  %1259 = vrot.lane.b32.xlu1 %v1198_v12, %s2827_s8  ;;  %v3192_v11 = vunpack.c.l.b16 %v2571_v8  ;;  %v3194_v12 = vunpack.c.l.b16 %v2570_v9  ;;  %v824_v8 = vld [vmem:[%s3044_s6 + $0x20] sm:$0xf] }
  0xa8   : > { %1257 = vrot.lane.b32.xlu0 %v1191_v15, %s2827_s8 }
  0xa9   : > { %v1317_v15 = vpack.c.b16 %v3192_v11, %v3192_v11  ;;  %v1316_v16 = vpack.c.b16 %v3194_v12, %v3194_v12 }
  0xaf   : > { %1267 = vrot.lane.b32.xlu2 %v1226_v29, %s2827_s8  ;;  %1265 = vrot.lane.b32.xlu1 %v1219_v30, %s2827_s8  ;;  %v1318_v29 = vpack.c.b16 %v3217_v23, %v3217_v23  ;;  %v2577_v30 = vld [vmem:[%s3044_s6 + $0x1c0] sm:$0xf] }
  0xb0   : > { %1263 = vrot.lane.b32.xlu0 %v1212_v32, %s2827_s8  ;;  %v2575_v32 = vld [vmem:[%s3044_s6 + $0x1b0] sm:$0xf]  ;;  %v1371_v33 = vunpack.c.l.b16 %v2577_v30 }
  0xb1   : > { %v1369_v36 = vunpack.c.l.b16 %v2575_v32 }
  0xb7   : > { %1321 = vrot.lane.b32.xlu2 %v1305_v40, %s2828_s9  ;;  %1271 = vrot.lane.b32.xlu1 %v1240_v41, %s2827_s8  ;;  %v1387_v40 = vpack.c.b16 %v1371_v33, %v1371_v33  ;;  %v1386_v41 = vpack.c.b16 %v1370_v34, %v1370_v34 }
  0xb8   : > { %1269 = vrot.lane.b32.xlu0 %v1233_v42, %s2827_s8  ;;  %v1385_v42 = vpack.c.b16 %v1369_v36, %v1369_v36  ;;  %v2588_v36 = vld [vmem:[%s3044_s6 + $0x220] sm:$0xf] }
  0xbf   : > { %1327 = vrot.lane.b32.xlu2 %v1308_v49, %s2828_s9  ;;  %1325 = vrot.lane.b32.xlu1 %v1307_v50, %s2828_s9  ;;  %v821_v49 = vld [vmem:[%s3044_s6 + $0x8] sm:$0xf]  ;;  %v1374_v50 = vunpack.c.l.b16 %v2580_v43 }
  0xc0   : > { %1323 = vrot.lane.b32.xlu0 %v1306_v51, %s2828_s9  ;;  %v1373_v51 = vunpack.c.l.b16 %v2579_v44 }
  0xc1   : > { %v3159_v58 = vpop.permute.xlu2 %1025  ;;  %v1390_v62 = vpack.c.b16 %v1374_v50, %v1374_v50 }
  0xc2   : > { %v1389_v63 = vpack.c.b16 %v1373_v51, %v1373_v51  ;;  %v1992_v18 = vsel %vm1977_vm1, %v824_v8, %v3159_v58  ;;  %v1382_v58 = vunpack.c.l.b16 %v2588_v36 }
  0xc7   : > { %1333 = vrot.lane.b32.xlu2 %v1311_v59, %s2828_s9  ;;  %1331 = vrot.lane.b32.xlu1 %v1310_v60, %s2828_s9 }
  0xc8   : > { %1329 = vrot.lane.b32.xlu0 %v1309_v61, %s2828_s9 }
  0xc9   : > { %v3179_v4 = vpop.permute.xlu2 %1027 }
  0xcf   : > { %1339 = vrot.lane.b32.xlu2 %v1314_v5, %s2828_s9  ;;  %1337 = vrot.lane.b32.xlu1 %v1313_v6, %s2828_s9  ;;  %v2583_v5 = vld [vmem:[%s3044_s6 + $0x1f8] sm:$0xf]  ;;  %v2582_v6 = vld [vmem:[%s3044_s6 + $0x1e8] sm:$0xf] }
  0xd0   : > { %1335 = vrot.lane.b32.xlu0 %v1312_v7, %s2828_s9  ;;  %v2581_v7 = vld [vmem:[%s3044_s6 + $0x1e0] sm:$0xf]  ;;  %v1377_v9 = vunpack.c.l.b16 %v2583_v5  ;;  %v1376_v10 = vunpack.c.l.b16 %v2582_v6 }
  0xd1   : > { %v3199_v14 = vpop.permute.xlu2 %1033 }
  0xd2   : > { %v1393_v30 = vpack.c.b16 %v1377_v9, %v1377_v9  ;;  %v1392_v31 = vpack.c.b16 %v1376_v10, %v1376_v10  ;;  %v820_v9 = vld [vmem:[%s3044_s6] sm:$0xf]  ;;  %v830_v10 = vld [vmem:[%s3044_s6 + $0x58] sm:$0xf] }
  0xd7   : > { %1345 = vrot.lane.b32.xlu2 %v1317_v15, %s2828_s9  ;;  %1343 = vrot.lane.b32.xlu1 %v1316_v16, %s2828_s9  ;;  %v1375_v15 = vunpack.c.l.b16 %v2581_v7  ;;  %v2603_v16 = vld [vmem:[%s3044_s6 + $0x18c] sm:$0x1] }
  0xd8   : > { %1341 = vrot.lane.b32.xlu0 %v1315_v17, %s2828_s9  ;;  %v2600_v17 = vld [vmem:[%s3044_s6 + $0x174] sm:$0x1]  ;;  %v1461_v32 = vunpack.c.l.b16 %v2603_v16 }
  0xd9   : > { %v3219_v24 = vpop.permute.xlu2 %1039  ;;  %v3221_v25 = vpop.permute.xlu1 %1021  ;;  %v1458_v33 = vunpack.c.l.b16 %v2600_v17  ;;  %v1391_v34 = vpack.c.b16 %v1375_v15, %v1375_v15 }
  0xda   : > { %v3223_v26 = vpop.permute.xlu0 %1017  ;;  %v1477_v44 = vpack.c.b16 %v1461_v32, %v3192_v11  ;;  %v1398_v11 = vpack.c.b16 %v1382_v58, %v1382_v58  ;;  %v2615_v58 = vld [vmem:[%s3044_s6 + $0x50] sm:$0xf] }
  0xdb   : > { %v1474_v45 = vpack.c.b16 %v1458_v33, %v3172_v1 }
  0xdc   : > { %v1568_v1 = vshll.u32 %v1477_v44, 16 }
  0xdd   : > { %v1547_v5 = vshll.u32 %v1474_v45, 16  ;;  %v1545_v15 = vshrl.u32 %v1474_v45, 16  ;;  %v1649_v45 = vunpack.c.l.b16 %v2615_v58 }
  0xdf   : > { %1351 = vrot.lane.b32.xlu2 %v1320_v27, %s2828_s9  ;;  %1349 = vrot.lane.b32.xlu1 %v1319_v28, %s2828_s9  ;;  %v2599_v27 = vld [vmem:[%s3044_s6 + $0x16c] sm:$0x1]  ;;  %v1549_v16 = vrot.slane %v1547_v5, 1 }
  0xe0   : > { %1347 = vrot.lane.b32.xlu0 %v1318_v29, %s2828_s9 }
  0xe1   : > { %v3237_v37 = vpop.permute.xlu2 %1045  ;;  %v3239_v38 = vpop.permute.xlu1 %1023 }
  0xe2   : > { %v1020_v39 = vpop.permute.xlu0 %1019 }
  0xe3   : > { %v1983_v53 = vsel %vm1977_vm1, %v821_v49, %v1020_v39  ;;  %v2587_v39 = vld [vmem:[%s3044_s6 + $0x218] sm:$0xf] }
  0xe4   : > { %v1381_v43 = vunpack.c.l.b16 %v2587_v39 }
  0xe7   : > { %1405 = vrot.lane.b32.xlu2 %v1387_v40, %s2829_s10  ;;  %1403 = vrot.lane.b32.xlu1 %v1386_v41, %s2829_s10  ;;  %v1457_v40 = vunpack.c.l.b16 %v2599_v27  ;;  %v2584_v41 = vld [vmem:[%s3044_s6 + $0x200] sm:$0xf]  ;;  %v1980_v27 = vsel %vm1977_vm1, %v820_v9, %v3223_v26  ;;  %v822_v26 = vld [vmem:[%s3044_s6 + $0x10] sm:$0xf] }
  0xe8   : > { %1401 = vrot.lane.b32.xlu0 %v1385_v42, %s2829_s10  ;;  %v827_v42 = vld [vmem:[%s3044_s6 + $0x38] sm:$0xf]  ;;  %v1378_v49 = vunpack.c.l.b16 %v2584_v41 }
  0xe9   : > { %v1032_v54 = vpop.permute.xlu1 %1031  ;;  %v1244_v59 = vpop.permute.xlu2 %1243  ;;  %v1473_v50 = vpack.c.b16 %v1457_v40, %v3174_v2  ;;  %v1566_v2 = vshrl.u32 %v1477_v44, 16  ;;  %v1550_v40 = vor.u32 %v1549_v16, %v1545_v15  ;;  %v833_v44 = vld [vmem:[%s3044_s6 + $0x70] sm:$0xf] }
  0xea   : > { %v3249_v60 = vpop.permute.xlu0 %1029  ;;  %v3252_v61 = vsel %vm2026_vm0, %v1983_v53, %v1244_v59  ;;  %v2001_v51 = vsel %vm1977_vm1, %v827_v42, %v1032_v54  ;;  %v2604_v59 = vld [vmem:[%s3044_s6 + $0x194] sm:$0x1]  ;;  %v1394_v6 = vpack.c.b16 %v1378_v49, %v1378_v49  ;;  %v1570_v54 = vrot.slane %v1568_v1, 1 }
  0xeb   : > { %v1540_v7 = vshll.u32 %v1473_v50, 16  ;;  %v1462_v8 = vunpack.c.l.b16 %v2604_v59  ;;  %v1538_v17 = vshrl.u32 %v1473_v50, 16 }
  0xec   : > { %v1571_v39 = vor.u32 %v1570_v54, %v1566_v2  ;;  %v2619_v2 = vld [vmem:[%s3044_s6 + $0x70] sm:$0xf]  ;;  %v825_v54 = vld [vmem:[%s3044_s6 + $0x28] sm:$0xf] }
  0xef   : > { %1411 = vrot.lane.b32.xlu2 %v1390_v62, %s2829_s10  ;;  %1409 = vrot.lane.b32.xlu1 %v1389_v63, %s2829_s10 }
  0xf0   : > { %1407 = vrot.lane.b32.xlu0 %v1388_v0, %s2829_s10  ;;  %v1397_v0 = vpack.c.b16 %v1381_v43, %v1381_v43  ;;  %v823_v43 = vld [vmem:[%s3044_s6 + $0x18] sm:$0xf] }
  0xf1   : > { %v1038_v19 = vpop.permute.xlu1 %1037  ;;  %v1250_v20 = vpop.permute.xlu2 %1249 }
  0xf2   : > { %v3266_v28 = vpop.permute.xlu0 %1035  ;;  %v3269_v29 = vsel %vm2026_vm0, %v1992_v18, %v1250_v20  ;;  %v1542_v18 = vrot.slane %v1540_v7, 1  ;;  %v1478_v20 = vpack.c.b16 %v1462_v8, %v3217_v23  ;;  %v2616_v23 = vld [vmem:[%s3044_s6 + $0x58] sm:$0xf]  ;;  %v1665_v8 = vpack.c.b16 %v1649_v45, %v1649_v45 }
  0xf4   : > { %v1543_v41 = vor.u32 %v1542_v18, %v1538_v17  ;;  %v1575_v42 = vshll.u32 %v1478_v20, 16  ;;  %v1573_v49 = vshrl.u32 %v1478_v20, 16  ;;  %v2651_v17 = vld [vmem:[%s3044_s6 + $0x74] sm:$0x1]  ;;  %v2648_v18 = vld [vmem:[%s3044_s6 + $0x5c] sm:$0x1]  ;;  %v1653_v20 = vunpack.c.l.b16 %v2619_v2 }
  0xf5   : > { %v1813_v58 = vunpack.c.l.b16 %v2651_v17 }
  0xf6   : > { %v1577_v50 = vrot.slane %v1575_v42, 1 }
  0xf7   : > { %1417 = vrot.lane.b32.xlu2 %v1393_v30, %s2829_s10  ;;  %1415 = vrot.lane.b32.xlu1 %v1392_v31, %s2829_s10  ;;  %v2010_v30 = vsel %vm1977_vm1, %v830_v10, %v1038_v19  ;;  %v1650_v19 = vunpack.c.l.b16 %v2616_v23  ;;  %v2620_v10 = vld [vmem:[%s3044_s6 + $0x78] sm:$0xf]  ;;  %v2636_v23 = vld [vmem:[%s3044_s6 + $0x108] sm:$0xf] }
  0xf8   : > { %1413 = vrot.lane.b32.xlu0 %v1391_v34, %s2829_s10  ;;  %v1578_v9 = vor.u32 %v1577_v50, %v1573_v49  ;;  %v3330_v16 = vunpack.c.l.b16 %v2620_v10  ;;  %v2635_v49 = vld [vmem:[%s3044_s6 + $0x100] sm:$0xf] }
  0xf9   : > { %v1044_v52 = vpop.permute.xlu1 %1043  ;;  %v1256_v53 = vpop.permute.xlu2 %1255 }
  0xfa   : > { %v3283_v62 = vpop.permute.xlu0 %1041  ;;  %v3286_v63 = vsel %vm2026_vm0, %v2001_v51, %v1256_v53  ;;  %v1989_v51 = vsel %vm1977_vm1, %v823_v43, %v3239_v38  ;;  %v2019_v53 = vsel %vm1977_vm1, %v833_v44, %v1044_v52  ;;  %v1666_v38 = vpack.c.b16 %v1650_v19, %v1650_v19  ;;  %v2631_v52 = vld [vmem:[%s3044_s6 + $0xe0] sm:$0xf] }
  0xfb   : > { %v1729_v15 = vunpack.c.l.b16 %v2631_v52  ;;  %v1810_v43 = vunpack.c.l.b16 %v2648_v18  ;;  %v1670_v44 = vpack.c.b16 %v3330_v16, %v3330_v16  ;;  %v2591_v52 = vld [vmem:[%s3044_s6 + $0x124] sm:$0x1] }
  0xff   : > { %1427 = vrot.lane.b32.xlu2 %v1398_v11, %s2829_s10  ;;  %1425 = vrot.lane.b32.xlu1 %v1397_v0, %s2829_s10  ;;  %v1986_v0 = vsel %vm1977_vm1, %v822_v26, %v3221_v25  ;;  %v826_v25 = vld [vmem:[%s3044_s6 + $0x30] sm:$0xf]  ;;  %v1669_v26 = vpack.c.b16 %v1653_v20, %v1653_v20 }
 0x100   : > { %1419 = vrot.lane.b32.xlu0 %v1394_v6, %s2829_s10 }
 0x101   : > { %v1262_v31 = vpop.permute.xlu2 %1261  ;;  %v1242_v32 = vpop.permute.xlu1 %1241 }
 0x102   : > { %v3297_v33 = vpop.permute.xlu0 %1047  ;;  %v3300_v34 = vsel %vm2026_vm0, %v2010_v30, %v1262_v31  ;;  %v2028_v36 = vsel %vm2026_vm0, %v1980_v27, %v1242_v32  ;;  %v1995_v27 = vsel %vm1977_vm1, %v825_v54, %v3179_v4  ;;  %v1998_v30 = vsel %vm1977_vm1, %v826_v25, %v3249_v60 }
 0x103   : > { %v1745_v60 = vpack.c.b16 %v1729_v15, %v1729_v15  ;;  %v2652_v15 = vld [vmem:[%s3044_s6 + $0x7c] sm:$0x1] }
 0x107   : > { %1617 = vrot.lane.b32.xlu2 %v1571_v39, %s2830_s11  ;;  %1611 = vrot.lane.b32.xlu1 %v1550_v40, %s2830_s11  ;;  %v2647_v39 = vld [vmem:[%s3044_s6 + $0x54] sm:$0x1] }
 0x108   : > { %1609 = vrot.lane.b32.xlu0 %v1543_v41, %s2830_s11  ;;  %v1809_v50 = vunpack.c.l.b16 %v2647_v39 }
 0x109   : > { %v1268_v59 = vpop.permute.xlu2 %1267  ;;  %v1248_v11 = vpop.permute.xlu1 %1247 }
 0x10a   : > { %v1246_v1 = vpop.permute.xlu0 %1245  ;;  %v3317_v5 = vsel %vm2026_vm0, %v2019_v53, %v1268_v59  ;;  %v2034_v6 = vsel %vm2026_vm0, %v1989_v51, %v1248_v11  ;;  %v1734_v51 = vunpack.c.l.b16 %v2636_v23  ;;  %v828_v53 = vld [vmem:[%s3044_s6 + $0x48] sm:$0xf]  ;;  %v829_v59 = vld [vmem:[%s3044_s6 + $0x50] sm:$0xf]  ;;  %v1829_v11 = vpack.c.b16 %v1813_v58, %v1653_v20  ;;  %v831_v23 = vld [vmem:[%s3044_s6 + $0x60] sm:$0xf] }
 0x10b   : > { %v3321_v7 = vsel %vm2026_vm0, %v1986_v0, %v1246_v1  ;;  %v1826_v0 = vpack.c.b16 %v1810_v43, %v1650_v19  ;;  %v1733_v1 = vunpack.c.l.b16 %v2635_v49  ;;  %v2004_v10 = vsel %vm1977_vm1, %v828_v53, %v3199_v14  ;;  %v832_v58 = vld [vmem:[%s3044_s6 + $0x68] sm:$0xf]  ;;  %v2596_v53 = vld [vmem:[%s3044_s6 + $0x14c] sm:$0x1] }
 0x10c   : > { %v2007_v2 = vsel %vm1977_vm1, %v829_v59, %v3266_v28  ;;  %v1750_v25 = vpack.c.b16 %v1734_v51, %v1734_v51  ;;  %v1920_v20 = vshll.u32 %v1829_v11, 16  ;;  %v1449_v28 = vunpack.c.l.b16 %v2591_v52 }
 0x10d   : > { %v1749_v14 = vpack.c.b16 %v1733_v1, %v1733_v1  ;;  %v1918_v43 = vshrl.u32 %v1829_v11, 16  ;;  %v2013_v59 = vsel %vm1977_vm1, %v831_v23, %v3219_v24  ;;  %v2016_v11 = vsel %vm1977_vm1, %v832_v58, %v3283_v62 }
 0x10e   : > { %v1465_v49 = vpack.c.b16 %v1449_v28, %v3124_v35  ;;  %v1454_v62 = vunpack.c.l.b16 %v2596_v53 }
 0x10f   : > { %1691 = vrot.lane.b32.xlu2 %v1666_v38, %s2831_s12  ;;  %1689 = vrot.lane.b32.xlu1 %v1665_v8, %s2831_s12  ;;  %v1825_v8 = vpack.c.b16 %v1809_v50, %v1649_v45 }
 0x110   : > { %1619 = vrot.lane.b32.xlu0 %v1578_v9, %s2830_s11  ;;  %v2592_v9 = vld [vmem:[%s3044_s6 + $0x12c] sm:$0x1] }
 0x111   : > { %v1322_v31 = vpop.permute.xlu2 %1321  ;;  %v1254_v32 = vpop.permute.xlu1 %1253  ;;  %v1892_v39 = vshll.u32 %v1825_v8, 16  ;;  %v1890_v50 = vshrl.u32 %v1825_v8, 16 }
 0x112   : > { %v1252_v40 = vpop.permute.xlu0 %1251  ;;  %v3341_v41 = vsel %vm2059_vm2, %v2028_v36, %v1322_v31  ;;  %v3344_v42 = vsel %vm2026_vm0, %v1998_v30, %v1254_v32  ;;  %v2632_v36 = vld [vmem:[%s3044_s6 + $0xe8] sm:$0xf]  ;;  %v1450_v31 = vunpack.c.l.b16 %v2592_v9 }
 0x113   : > { %v3348_v4 = vsel %vm2026_vm0, %v1995_v27, %v1252_v40  ;;  %v1730_v38 = vunpack.c.l.b16 %v2632_v36  ;;  %v1899_v27 = vshll.u32 %v1826_v0, 16  ;;  %v1814_v40 = vunpack.c.l.b16 %v2652_v15 }
 0x114   : > { %v1894_v36 = vrot.slane %v1892_v39, 1 }
 0x115   : > { %v1746_v32 = vpack.c.b16 %v1730_v38, %v1730_v38  ;;  %v1830_v51 = vpack.c.b16 %v1814_v40, %v3330_v16 }
 0x117   : > { %1769 = vrot.lane.b32.xlu2 %v1745_v60, %s2832_s13  ;;  %1699 = vrot.lane.b32.xlu1 %v1670_v44, %s2831_s12  ;;  %v1922_v60 = vrot.slane %v1920_v20, 1  ;;  %v1901_v44 = vrot.slane %v1899_v27, 1  ;;  %v1482_v20 = vshrl.u32 %v1465_v49, 16 }
 0x118   : > { %1697 = vrot.lane.b32.xlu0 %v1669_v26, %s2831_s12  ;;  %v1466_v26 = vpack.c.b16 %v1450_v31, %v3139_v48  ;;  %v2595_v48 = vld [vmem:[%s3044_s6 + $0x144] sm:$0x1]  ;;  %v1925_v31 = vshrl.u32 %v1830_v51, 16 }
 0x119   : > { %v1328_v54 = vpop.permute.xlu2 %1327  ;;  %v1260_v19 = vpop.permute.xlu1 %1259  ;;  %v1923_v16 = vor.u32 %v1922_v60, %v1918_v43 }
 0x11a   : > { %v1258_v17 = vpop.permute.xlu0 %1257  ;;  %v3367_v18 = vsel %vm2059_vm2, %v2034_v6, %v1328_v54  ;;  %v2046_v45 = vsel %vm2026_vm0, %v2007_v2, %v1260_v19  ;;  %v1897_v6 = vshrl.u32 %v1826_v0, 16  ;;  %v1491_v24 = vshll.u32 %v1466_v26, 16 }
 0x11b   : > { %v3371_v30 = vsel %vm2026_vm0, %v2004_v10, %v1258_v17  ;;  %v1484_v10 = vshll.u32 %v1465_v49, 16  ;;  %v1895_v2 = vor.u32 %v1894_v36, %v1890_v50  ;;  %v1927_v54 = vshll.u32 %v1830_v51, 16  ;;  %v834_v17 = vld [vmem:[%s3044_s6 + $0x78] sm:$0xf] }
 0x11c   : > { %v1902_v9 = vor.u32 %v1901_v44, %v1897_v6  ;;  %v1453_v19 = vunpack.c.l.b16 %v2595_v48  ;;  %v1489_v15 = vshrl.u32 %v1466_v26, 16  ;;  %v2022_v58 = vsel %vm1977_vm1, %v834_v17, %v3237_v37 }
 0x11d   : > { %v1486_v27 = vrot.slane %v1484_v10, 1  ;;  %v1929_v28 = vrot.slane %v1927_v54, 1 }
 0x11f   : > { %1779 = vrot.lane.b32.xlu2 %v1750_v25, %s2832_s13  ;;  %1777 = vrot.lane.b32.xlu1 %v1749_v14, %s2832_s13  ;;  %v835_v25 = vld [vmem:[%s3044_s6 + $0x80] sm:$0xf]  ;;  %v1470_v14 = vpack.c.b16 %v1454_v62, %v3154_v56  ;;  %v1487_v26 = vor.u32 %v1486_v27, %v1482_v20  ;;  %v1930_v49 = vor.u32 %v1929_v28, %v1925_v31  ;;  %v2611_v62 = vld [vmem:[%s3044_s6 + $0x28] sm:$0xf] }
 0x120   : > { %1771 = vrot.lane.b32.xlu0 %v1746_v32, %s2832_s13  ;;  %v1469_v32 = vpack.c.b16 %v1453_v19, %v3157_v57  ;;  %v2025_v39 = vsel %vm1977_vm1, %v835_v25, %v3297_v33  ;;  %v2607_v33 = vld [vmem:[%s3044_s6 + $0x8] sm:$0xf]  ;;  %v2639_v19 = vld [vmem:[%s3044_s6 + $0xc] sm:$0x1]  ;;  %v2627_v28 = vld [vmem:[%s3044_s6 + $0xb8] sm:$0xf] }
 0x121   : > { %v1334_v0 = vpop.permute.xlu2 %1333  ;;  %v1266_v1 = vpop.permute.xlu1 %1265  ;;  %v1519_v57 = vshll.u32 %v1470_v14, 16  ;;  %v1641_v37 = vunpack.c.l.b16 %v2607_v33 }
 0x122   : > { %v1264_v38 = vpop.permute.xlu0 %1263  ;;  %v3389_v35 = vsel %vm2059_vm2, %v3344_v42, %v1334_v0  ;;  %v2052_v8 = vsel %vm2026_vm0, %v2016_v11, %v1266_v1  ;;  %v1493_v42 = vrot.slane %v1491_v24, 1  ;;  %v1512_v50 = vshll.u32 %v1469_v32, 16  ;;  %v2612_v24 = vld [vmem:[%s3044_s6 + $0x30] sm:$0xf] }
 0x123   : > { %v3393_v52 = vsel %vm2026_vm0, %v2013_v59, %v1264_v38  ;;  %v1521_v36 = vrot.slane %v1519_v57, 1  ;;  %v1510_v51 = vshrl.u32 %v1469_v32, 16  ;;  %v1646_v54 = vunpack.c.l.b16 %v2612_v24  ;;  %v2624_v32 = vld [vmem:[%s3044_s6 + $0xa0] sm:$0xf] }
 0x124   : > { %v1494_v44 = vor.u32 %v1493_v42, %v1489_v15  ;;  %v1514_v53 = vrot.slane %v1512_v50, 1  ;;  %v2643_v50 = vld [vmem:[%s3044_s6 + $0x2c] sm:$0x1]  ;;  %v2628_v24 = vld [vmem:[%s3044_s6 + $0xc0] sm:$0xf] }
 0x125   : > { %v1662_v27 = vpack.c.b16 %v1646_v54, %v1646_v54 }
 0x126   : > { %v1515_v10 = vor.u32 %v1514_v53, %v1510_v51 }
 0x127   : > { %1969 = vrot.lane.b32.xlu2 %v1923_v16, %s2833_s14  ;;  %1963 = vrot.lane.b32.xlu1 %v1902_v9, %s2833_s14  ;;  %v1657_v16 = vpack.c.b16 %v1641_v37, %v1641_v37 }
 0x128   : > { %1961 = vrot.lane.b32.xlu0 %v1895_v2, %s2833_s14  ;;  %v2608_v2 = vld [vmem:[%s3044_s6 + $0x10] sm:$0xf] }
 0x129   : > { %v1340_v40 = vpop.permute.xlu2 %1339  ;;  %v1272_v23 = vpop.permute.xlu1 %1271 }
 0x12a   : > { %v1270_v43 = vpop.permute.xlu0 %1269  ;;  %v3407_v60 = vsel %vm2059_vm2, %v2046_v45, %v1340_v40  ;;  %v2058_v56 = vsel %vm2026_vm0, %v2025_v39, %v1272_v23  ;;  %v1517_v45 = vshrl.u32 %v1470_v14, 16  ;;  %v1801_v40 = vunpack.c.l.b16 %v2639_v19 }
 0x12b   : > { %v3411_v6 = vsel %vm2026_vm0, %v2022_v58, %v1270_v43  ;;  %v2623_v58 = vld [vmem:[%s3044_s6 + $0x98] sm:$0xf]  ;;  %v1725_v43 = vunpack.c.l.b16 %v2627_v28  ;;  %v2585_v28 = vld [vmem:[%s3044_s6 + $0x208] sm:$0xf] }
 0x12c   : > { %v1522_v9 = vor.u32 %v1521_v36, %v1517_v45 }
 0x12d   : > { %v1741_v51 = vpack.c.b16 %v1725_v43, %v1725_v43  ;;  %v2602_v43 = vld [vmem:[%s3044_s6 + $0x184] sm:$0x1] }
 0x12f   : > { %1595 = vrot.lane.b32.xlu2 %v1494_v44, %s2830_s11  ;;  %1593 = vrot.lane.b32.xlu1 %v1487_v26, %s2830_s11  ;;  %v1817_v44 = vpack.c.b16 %v1801_v40, %v1641_v37  ;;  %v2644_v26 = vld [vmem:[%s3044_s6 + $0x34] sm:$0x1]  ;;  %v1379_v40 = vunpack.c.l.b16 %v2585_v28 }
 0x130   : > { %1971 = vrot.lane.b32.xlu0 %v1930_v49, %s2833_s14 }
 0x131   : > { %v1346_v59 = vpop.permute.xlu2 %1345  ;;  %v1326_v11 = vpop.permute.xlu1 %1325 }
 0x132   : > { %v1324_v0 = vpop.permute.xlu0 %1323  ;;  %v3418_v1 = vsel %vm2059_vm2, %v2052_v8, %v1346_v59  ;;  %v2065_v48 = vsel %vm2059_vm2, %v3321_v7, %v1326_v11  ;;  %v1645_v8 = vunpack.c.l.b16 %v2611_v62  ;;  %v1642_v7 = vunpack.c.l.b16 %v2608_v2 }
 0x133   : > { %v3424_v38 = vsel %vm2059_vm2, %v3252_v61, %v1324_v0  ;;  %v2640_v61 = vld [vmem:[%s3044_s6 + $0x14] sm:$0x1]  ;;  %v1836_v11 = vshll.u32 %v1817_v44, 16  ;;  %v1806_v0 = vunpack.c.l.b16 %v2644_v26 }
 0x134   : > { %v1661_v31 = vpack.c.b16 %v1645_v8, %v1645_v8  ;;  %v1802_v39 = vunpack.c.l.b16 %v2640_v61  ;;  %v1658_v23 = vpack.c.b16 %v1642_v7, %v1642_v7 }
 0x135   : > { %v1838_v62 = vrot.slane %v1836_v11, 1  ;;  %v1822_v2 = vpack.c.b16 %v1806_v0, %v1646_v54  ;;  %v2589_v11 = vld [vmem:[%s3044_s6 + $0x228] sm:$0xf] }
 0x137   : > { %1673 = vrot.lane.b32.xlu2 %v1657_v16, %s2831_s12  ;;  %1603 = vrot.lane.b32.xlu1 %v1522_v9, %s2830_s11  ;;  %v1805_v9 = vunpack.c.l.b16 %v2643_v50 }
 0x138   : > { %1601 = vrot.lane.b32.xlu0 %v1515_v10, %s2830_s11 }
 0x139   : > { %v1352_v25 = vpop.permute.xlu2 %1351  ;;  %v1332_v15 = vpop.permute.xlu1 %1331 }
 0x13a   : > { %v1330_v17 = vpop.permute.xlu0 %1329  ;;  %v3435_v42 = vsel %vm2059_vm2, %v2058_v56, %v1352_v25  ;;  %v2071_v20 = vsel %vm2059_vm2, %v3348_v4, %v1332_v15  ;;  %v1722_v56 = vunpack.c.l.b16 %v2624_v32  ;;  %v1818_v4 = vpack.c.b16 %v1802_v39, %v1642_v7 }
 0x13b   : > { %v3441_v14 = vsel %vm2059_vm2, %v3269_v29, %v1330_v17  ;;  %v1721_v29 = vunpack.c.l.b16 %v2623_v58  ;;  %v1821_v7 = vpack.c.b16 %v1805_v9, %v1645_v8  ;;  %v1871_v8 = vshll.u32 %v1822_v2, 16  ;;  %v2605_v58 = vld [vmem:[%s3044_s6 + $0x19c] sm:$0x1] }
 0x13c   : > { %v1738_v53 = vpack.c.b16 %v1722_v56, %v1722_v56  ;;  %v1843_v59 = vshll.u32 %v1818_v4, 16  ;;  %v1841_v10 = vshrl.u32 %v1818_v4, 16 }
 0x13d   : > { %v1737_v16 = vpack.c.b16 %v1721_v29, %v1721_v29  ;;  %v1864_v39 = vshll.u32 %v1821_v7, 16 }
 0x13f   : > { %1683 = vrot.lane.b32.xlu2 %v1662_v27, %s2831_s12  ;;  %1681 = vrot.lane.b32.xlu1 %v1661_v31, %s2831_s12 }
 0x140   : > { %1675 = vrot.lane.b32.xlu0 %v1658_v23, %s2831_s12  ;;  %v1866_v23 = vrot.slane %v1864_v39, 1 }
 0x141   : > { %v1406_v57 = vpop.permute.xlu2 %1405  ;;  %v1338_v49 = vpop.permute.xlu1 %1337 }
 0x142   : > { %v1336_v33 = vpop.permute.xlu0 %1335  ;;  %v3452_v45 = vsel %vm2092_vm3, %v2065_v48, %v1406_v57  ;;  %v3456_v36 = vsel %vm2059_vm2, %v3371_v30, %v1338_v49  ;;  %v1845_v30 = vrot.slane %v1843_v59, 1  ;;  %v1834_v48 = vshrl.u32 %v1817_v44, 16  ;;  %v2601_v44 = vld [vmem:[%s3044_s6 + $0x17c] sm:$0x1] }
 0x143   : > { %v3460_v37 = vsel %vm2059_vm2, %v3286_v63, %v1336_v33  ;;  %v1726_v63 = vunpack.c.l.b16 %v2628_v24  ;;  %v1395_v57 = vpack.c.b16 %v1379_v40, %v1379_v40  ;;  %v2590_v33 = vld [vmem:[%s3044_s6 + $0x230] sm:$0xf]  ;;  %v1459_v0 = vunpack.c.l.b16 %v2601_v44 }
 0x144   : > { %v1846_v54 = vor.u32 %v1845_v30, %v1841_v10  ;;  %v1839_v31 = vor.u32 %v1838_v62, %v1834_v48  ;;  %v1384_v9 = vunpack.c.l.b16 %v2590_v33 }
 0x145   : > { %v1742_v32 = vpack.c.b16 %v1726_v63, %v1726_v63  ;;  %v1475_v30 = vpack.c.b16 %v1459_v0, %v3197_v13 }
 0x147   : > { %1761 = vrot.lane.b32.xlu2 %v1741_v51, %s2832_s13  ;;  %1755 = vrot.lane.b32.xlu1 %v1738_v53, %s2832_s13  ;;  %v1463_v51 = vunpack.c.l.b16 %v2605_v58  ;;  %v1460_v53 = vunpack.c.l.b16 %v2602_v43 }
 0x148   : > { %1753 = vrot.lane.b32.xlu0 %v1737_v16, %s2832_s13  ;;  %v2586_v16 = vld [vmem:[%s3044_s6 + $0x210] sm:$0xf] }
 0x149   : > { %v1412_v61 = vpop.permute.xlu2 %1411  ;;  %v1344_v19 = vpop.permute.xlu1 %1343  ;;  %v1479_v24 = vpack.c.b16 %v1463_v51, %v3214_v22  ;;  %v1380_v10 = vunpack.c.l.b16 %v2586_v16 }
 0x14a   : > { %v1342_v25 = vpop.permute.xlu0 %1341  ;;  %v3467_v15 = vsel %vm2092_vm3, %v2071_v20, %v1412_v61  ;;  %v3471_v17 = vsel %vm2059_vm2, %v3393_v52, %v1344_v19  ;;  %v1869_v52 = vshrl.u32 %v1822_v2, 16  ;;  %v1873_v20 = vrot.slane %v1871_v8, 1  ;;  %v2606_v2 = vld [vmem:[%s3044_s6 + $0x1a4] sm:$0x1] }
 0x14b   : > { %v3475_v27 = vsel %vm2059_vm2, %v3300_v34, %v1342_v25  ;;  %v1862_v34 = vshrl.u32 %v1821_v7, 16  ;;  %v1400_v61 = vpack.c.b16 %v1384_v9, %v1384_v9  ;;  %v1582_v19 = vshll.u32 %v1479_v24, 16 }
 0x14c   : > { %v1874_v50 = vor.u32 %v1873_v20, %v1869_v52  ;;  %v1464_v13 = vunpack.c.l.b16 %v2606_v2  ;;  %v1580_v28 = vshrl.u32 %v1479_v24, 16  ;;  %v2633_v24 = vld [vmem:[%s3044_s6 + $0xf0] sm:$0xf] }
 0x14d   : > { %v1867_v59 = vor.u32 %v1866_v23, %v1862_v34  ;;  %v1584_v8 = vrot.slane %v1582_v19, 1 }
 0x14e   : > { %v1480_v40 = vpack.c.b16 %v1464_v13, %v3212_v21 }
 0x14f   : > { %1947 = vrot.lane.b32.xlu2 %v1846_v54, %s2833_s14  ;;  %1945 = vrot.lane.b32.xlu1 %v1839_v31, %s2833_s14  ;;  %v1396_v54 = vpack.c.b16 %v1380_v10, %v1380_v10  ;;  %v1554_v31 = vshll.u32 %v1475_v30, 16  ;;  %v1585_v43 = vor.u32 %v1584_v8, %v1580_v28  ;;  %v2621_v10 = vld [vmem:[%s3044_s6 + $0x80] sm:$0xf] }
 0x150   : > { %1763 = vrot.lane.b32.xlu0 %v1742_v32, %s2832_s13  ;;  %v1587_v33 = vshrl.u32 %v1480_v40, 16  ;;  %v1655_v2 = vunpack.c.l.b16 %v2621_v10 }
 0x151   : > { %v3483_v56 = vpop.permute.xlu2 %1417  ;;  %v1350_v4 = vpop.permute.xlu1 %1349  ;;  %v1556_v39 = vrot.slane %v1554_v31, 1 }
 0x152   : > { %v1348_v29 = vpop.permute.xlu0 %1347  ;;  %v3488_v26 = vsel %vm2059_vm2, %v3411_v6, %v1350_v4  ;;  %v1383_v6 = vunpack.c.l.b16 %v2589_v11 }
 0x153   : > { %v3492_v49 = vsel %vm2059_vm2, %v3317_v5, %v1348_v29  ;;  %v1476_v5 = vpack.c.b16 %v1460_v53, %v3194_v12  ;;  %v1589_v29 = vshll.u32 %v1480_v40, 16 }
 0x154   : > { %v1399_v12 = vpack.c.b16 %v1383_v6, %v1383_v6 }
 0x155   : > { %v1561_v25 = vshll.u32 %v1476_v5, 16 }
 0x157   : > { %1421 = vrot.lane.b32.xlu2 %v1395_v57, %s2829_s10  ;;  %1955 = vrot.lane.b32.xlu1 %v1874_v50, %s2833_s14  ;;  %v1563_v32 = vrot.slane %v1561_v25, 1  ;;  %v2618_v57 = vld [vmem:[%s3044_s6 + $0x68] sm:$0xf]  ;;  %v2617_v50 = vld [vmem:[%s3044_s6 + $0x60] sm:$0xf] }
 0x158   : > { %1953 = vrot.lane.b32.xlu0 %v1867_v59, %s2833_s14  ;;  %v1652_v21 = vunpack.c.l.b16 %v2618_v57  ;;  %v2649_v25 = vld [vmem:[%s3044_s6 + $0x64] sm:$0x1]  ;;  %v2755_v57 = vld [vmem:[%s3860_s1 + $0x8] sm:$0xff] }
 0x159   : > { %v3503_v48 = vpop.permute.xlu2 %1427  ;;  %v1404_v62 = vpop.permute.xlu1 %1403  ;;  %v1811_v40 = vunpack.c.l.b16 %v2649_v25 }
 0x15a   : > { %v1402_v63 = vpop.permute.xlu0 %1401  ;;  %v3508_v7 = vsel %vm2092_vm3, %v3424_v38, %v1404_v62  ;;  %v1559_v38 = vshrl.u32 %v1476_v5, 16  ;;  %v1668_v16 = vpack.c.b16 %v1652_v21, %v1652_v21  ;;  %v2622_v5 = vld [vmem:[%s3044_s6 + $0x88] sm:$0xf]  ;;  %v2653_v62 = vld [vmem:[%s3044_s6 + $0x84] sm:$0x1] }
 0x15b   : > { %v3512_v22 = vsel %vm2092_vm3, %v3341_v41, %v1402_v63  ;;  %v1552_v41 = vshrl.u32 %v1475_v30, 16  ;;  %v1731_v30 = vunpack.c.l.b16 %v2633_v24  ;;  %v2650_v63 = vld [vmem:[%s3044_s6 + $0x6c] sm:$0x1]  ;;  %v1815_v31 = vunpack.c.l.b16 %v2653_v62 }
 0x15c   : > { %v1564_v4 = vor.u32 %v1563_v32, %v1559_v38  ;;  %v2638_v38 = vld [vmem:[%s3044_s6 + $0x118] sm:$0xf]  ;;  %v1812_v32 = vunpack.c.l.b16 %v2650_v63 }
 0x15d   : > { %v1557_v44 = vor.u32 %v1556_v39, %v1552_v41  ;;  %v1747_v28 = vpack.c.b16 %v1731_v30, %v1731_v30  ;;  %v1671_v41 = vpack.c.b16 %v1655_v2, %v1655_v2  ;;  %v2637_v39 = vld [vmem:[%s3044_s6 + $0x110] sm:$0xf] }
 0x15f   : > { %1431 = vrot.lane.b32.xlu2 %v1400_v61, %s2829_s10  ;;  %1429 = vrot.lane.b32.xlu1 %v1399_v12, %s2829_s10 }
 0x160   : > { %1423 = vrot.lane.b32.xlu0 %v1396_v54, %s2829_s10 }
 0x161   : > { %v3518_v52 = vpop.permute.xlu2 %1617  ;;  %v1410_v20 = vpop.permute.xlu1 %1409 }
 0x162   : > { %v1408_v34 = vpop.permute.xlu0 %1407  ;;  %v3522_v23 = vsel %vm2092_vm3, %v3441_v14, %v1410_v20  ;;  %v1651_v14 = vunpack.c.l.b16 %v2617_v50 }
 0x163   : > { %v3526_v58 = vsel %vm2092_vm3, %v3367_v18, %v1408_v34  ;;  %v1591_v18 = vrot.slane %v1589_v29, 1  ;;  %v2634_v34 = vld [vmem:[%s3044_s6 + $0xf8] sm:$0xf]  ;;  %v1828_v29 = vpack.c.b16 %v1812_v32, %v1652_v21 }
 0x164   : > { %v1667_v9 = vpack.c.b16 %v1651_v14, %v1651_v14  ;;  %v1732_v50 = vunpack.c.l.b16 %v2634_v34  ;;  %v2597_v34 = vld [vmem:[%s3044_s6 + $0x154] sm:$0x1] }
 0x165   : > { %v1592_v6 = vor.u32 %v1591_v18, %v1587_v33  ;;  %v1827_v33 = vpack.c.b16 %v1811_v40, %v1651_v14  ;;  %v2594_v18 = vld [vmem:[%s3044_s6 + $0x13c] sm:$0x1]  ;;  %v1913_v10 = vshll.u32 %v1828_v29, 16  ;;  %v2754_v14 = vld [vmem:[%s3860_s1] sm:$0xff] }
 0x166   : > { %v1452_v30 = vunpack.c.l.b16 %v2594_v18  ;;  %v1455_v18 = vunpack.c.l.b16 %v2597_v34  ;;  %v2613_v34 = vld [vmem:[%s3044_s6 + $0x38] sm:$0xf] }
 0x167   : > { %1621 = vrot.lane.b32.xlu2 %v1585_v43, %s2830_s11  ;;  %1615 = vrot.lane.b32.xlu1 %v1564_v4, %s2830_s11  ;;  %v1736_v43 = vunpack.c.l.b16 %v2638_v38  ;;  %v1831_v4 = vpack.c.b16 %v1815_v31, %v1655_v2  ;;  %v1906_v2 = vshll.u32 %v1827_v33, 16  ;;  %v1911_v31 = vshrl.u32 %v1828_v29, 16 }
 0x168   : > { %1613 = vrot.lane.b32.xlu0 %v1557_v44, %s2830_s11  ;;  %v1735_v44 = vunpack.c.l.b16 %v2637_v39  ;;  %v1904_v38 = vshrl.u32 %v1827_v33, 16  ;;  %v2598_v39 = vld [vmem:[%s3044_s6 + $0x15c] sm:$0x1] }
 0x169   : > { %v3533_v51 = vpop.permute.xlu2 %1691  ;;  %v1416_v53 = vpop.permute.xlu1 %1415  ;;  %v1752_v21 = vpack.c.b16 %v1736_v43, %v1736_v43  ;;  %v1934_v24 = vshll.u32 %v1831_v4, 16  ;;  %v1908_v32 = vrot.slane %v1906_v2, 1 }
 0x16a   : > { %v1414_v59 = vpop.permute.xlu0 %1413  ;;  %v3537_v11 = vsel %vm2092_vm3, %v3460_v37, %v1416_v53  ;;  %v3548_v37 = vunpack.c.l.b16 %v2622_v5  ;;  %v2593_v53 = vld [vmem:[%s3044_s6 + $0x134] sm:$0x1]  ;;  %v1751_v5 = vpack.c.b16 %v1735_v44, %v1735_v44 }
 0x16b   : > { %v3541_v0 = vsel %vm2092_vm3, %v3389_v35, %v1414_v59  ;;  %v2261_v35 = vld [vmem:[%s3860_s1 + $0x10] sm:$0x3]  ;;  %v1451_v62 = vunpack.c.l.b16 %v2593_v53  ;;  %v1936_v25 = vrot.slane %v1934_v24, 1 }
 0x16c   : > { %v2311_v61 = vunpack.c.l.b16 %v2261_v35  ;;  %v1672_v8 = vpack.c.b16 %v3548_v37, %v3548_v37  ;;  %v1748_v35 = vpack.c.b16 %v1732_v50, %v1732_v50  ;;  %v1909_v50 = vor.u32 %v1908_v32, %v1904_v38 }
 0x16e   : > { %v2314_v13 = vpack.c.b16 %v2311_v61, %v2311_v61  ;;  %v1932_v61 = vshrl.u32 %v1831_v4, 16 }
 0x16f   : > { %1695 = vrot.lane.b32.xlu2 %v1668_v16, %s2831_s12  ;;  %1693 = vrot.lane.b32.xlu1 %v1667_v9, %s2831_s12  ;;  %v2654_v9 = vld [vmem:[%s3044_s6 + $0x8c] sm:$0x1] }
 0x170   : > { %1623 = vrot.lane.b32.xlu0 %v1592_v6, %s2830_s11  ;;  %v2344_v20 = vsel %vm2342_vm4, %v2314_v13, 0  ;;  %v1816_v63 = vunpack.c.l.b16 %v2654_v9  ;;  %v1915_v13 = vrot.slane %v1913_v10, 1  ;;  %v1937_v4 = vor.u32 %v1936_v25, %v1932_v61 }
 0x171   : > { %v3556_v12 = vpop.permute.xlu2 %1769  ;;  %v3558_v19 = vpop.permute.xlu1 %1425  ;;  %2757 = vmatpush.bf16.msra.mxu2 %v2344_v20  ;;  %2758 = vmatpush.bf16.msra.mxu3 %v2344_v20  ;;  %v1471_v10 = vpack.c.b16 %v1455_v18, %v3152_v55 }
 0x172   : > { %v3561_v54 = vpop.permute.xlu0 %1419  ;;  %2351 = vmatpush.bf16.msra.mxu0 %v2344_v20  ;;  %2756 = vmatpush.bf16.msra.mxu1 %v2344_v20  ;;  %v1916_v44 = vor.u32 %v1915_v13, %v1911_v31  ;;  %v2609_v31 = vld [vmem:[%s3044_s6 + $0x18] sm:$0xf] }
 0x173   : > { %v1526_v25 = vshll.u32 %v1471_v10, 16  ;;  %v1643_v13 = vunpack.c.l.b16 %v2609_v31 }
 0x175   : > { %2760 = vmatpush.bf16.msra.mxu2 %v2755_v57  ;;  %2761 = vmatpush.bf16.msra.mxu3 %v2755_v57 }
 0x176   : > { %2352 = vmatpush.bf16.msra.mxu0 %v2755_v57  ;;  %2759 = vmatpush.bf16.msra.mxu1 %v2755_v57 }
 0x177   : > { %1773 = vrot.lane.b32.xlu2 %v1747_v28, %s2832_s13  ;;  %1703 = vrot.lane.b32.xlu1 %v1672_v8, %s2831_s12  ;;  %v1468_v28 = vpack.c.b16 %v1452_v30, %v3134_v46  ;;  %v1467_v8 = vpack.c.b16 %v1451_v62, %v3136_v47  ;;  %v1456_v46 = vunpack.c.l.b16 %v2598_v39 }
 0x178   : > { %1701 = vrot.lane.b32.xlu0 %v1671_v41, %s2831_s12  ;;  %v1832_v41 = vpack.c.b16 %v1816_v63, %v3548_v37 }
 0x179   : > { %v3576_v59 = vpop.permute.xlu2 %1779  ;;  %v3578_v16 = vpop.permute.xlu1 %1611  ;;  %2763 = vmatpush.bf16.msra.mxu2 %v2754_v14  ;;  %2764 = vmatpush.bf16.msra.mxu3 %v2754_v14  ;;  %v1505_v29 = vshll.u32 %v1468_v28, 16  ;;  %v1498_v57 = vshll.u32 %v1467_v8, 16  ;;  %v1503_v53 = vshrl.u32 %v1468_v28, 16  ;;  %v1496_v33 = vshrl.u32 %v1467_v8, 16 }
 0x17a   : > { %v3581_v6 = vpop.permute.xlu0 %1609  ;;  %2353 = vmatpush.bf16.msra.mxu0 %v2754_v14  ;;  %2762 = vmatpush.bf16.msra.mxu1 %v2754_v14  ;;  %v1941_v47 = vshll.u32 %v1832_v41, 16  ;;  %v1939_v24 = vshrl.u32 %v1832_v41, 16  ;;  %v1524_v28 = vshrl.u32 %v1471_v10, 16  ;;  %v1528_v8 = vrot.slane %v1526_v25, 1 }
 0x17b   : > { %v1507_v37 = vrot.slane %v1505_v29, 1  ;;  %v1500_v9 = vrot.slane %v1498_v57, 1  ;;  %v2614_v57 = vld [vmem:[%s3044_s6 + $0x40] sm:$0xf] }
 0x17c   : > { %v1529_v29 = vor.u32 %v1528_v8, %v1524_v28  ;;  %v2625_v8 = vld [vmem:[%s3044_s6 + $0xa8] sm:$0xf] }
 0x17d   : > { %v1501_v2 = vor.u32 %v1500_v9, %v1496_v33 }
 0x17f   : > { %1783 = vrot.lane.b32.xlu2 %v1752_v21, %s2832_s13  ;;  %1781 = vrot.lane.b32.xlu1 %v1751_v5, %s2832_s13  ;;  %v1472_v21 = vpack.c.b16 %v1456_v46, %v3177_v3  ;;  %v1943_v5 = vrot.slane %v1941_v47, 1  ;;  %v2110_v46 = vsel %vm2092_vm3, %v3456_v36, %v3483_v56  ;;  %v2610_v47 = vld [vmem:[%s3044_s6 + $0x20] sm:$0xf] }
 0x180   : > { %1775 = vrot.lane.b32.xlu0 %v1748_v35, %s2832_s13  ;;  %v1508_v35 = vor.u32 %v1507_v37, %v1503_v53  ;;  %v2143_v18 = vsel %vm2125_vm5, %v2110_v46, %v3581_v6  ;;  %v3628_v53 = vunpack.c.l.b16 %v2613_v34  ;;  %v3634_v37 = vunpack.c.l.b16 %v2614_v57 }
 0x181   : > { %v3593_v40 = vpop.permute.xlu2 %1969  ;;  %v1690_v20 = vpop.permute.xlu1 %1689  ;;  %v1533_v63 = vshll.u32 %v1472_v21, 16  ;;  %v1944_v61 = vor.u32 %v1943_v5, %v1939_v24  ;;  %v1531_v3 = vshrl.u32 %v1472_v21, 16  ;;  %v1644_v56 = vunpack.c.l.b16 %v2610_v47 }
 0x182   : > { %v3596_v43 = vpop.permute.xlu0 %1619  ;;  %v2118_v6 = vsel %vm2092_vm3, %v3418_v1, %v3558_v19  ;;  %v1663_v5 = vpack.c.b16 %v3628_v53, %v3628_v53 }
 0x183   : > { %v1535_v55 = vrot.slane %v1533_v63, 1  ;;  %v1660_v31 = vpack.c.b16 %v1644_v56, %v1644_v56 }
 0x185   : > { %v1536_v39 = vor.u32 %v1535_v55, %v1531_v3  ;;  %v2629_v3 = vld [vmem:[%s3044_s6 + $0xc8] sm:$0xf] }
 0x187   : > { %1973 = vrot.lane.b32.xlu2 %v1937_v4, %s2833_s14  ;;  %1967 = vrot.lane.b32.xlu1 %v1916_v44, %s2833_s14  ;;  %v1659_v4 = vpack.c.b16 %v1643_v13, %v1643_v13  ;;  %v2112_v44 = vsel %vm2092_vm3, %v3407_v60, %v3561_v54  ;;  %v2176_v60 = vsel %vm2158_vm6, %v2143_v18, %v1690_v20  ;;  %v2641_v54 = vld [vmem:[%s3044_s6 + $0x1c] sm:$0x1] }
 0x188   : > { %1965 = vrot.lane.b32.xlu0 %v1909_v50, %s2833_s14  ;;  %v2145_v50 = vsel %vm2125_vm5, %v2112_v44, %v3578_v16  ;;  %v2642_v16 = vld [vmem:[%s3044_s6 + $0x24] sm:$0x1]  ;;  %v1803_v10 = vunpack.c.l.b16 %v2641_v54 }
 0x189   : > { %v3603_v30 = vpop.permute.xlu2 %1595  ;;  %v3605_v62 = vpop.permute.xlu1 %1699  ;;  %v2178_v36 = vsel %vm2158_vm6, %v2145_v50, %v3533_v51  ;;  %v2209_v51 = vsel %vm2191_vm7, %v2176_v60, %v3556_v12  ;;  %v1804_v63 = vunpack.c.l.b16 %v2642_v16  ;;  %v2151_v12 = vsel %vm2125_vm5, %v2118_v6, %v3518_v52  ;;  %v2630_v6 = vld [vmem:[%s3044_s6 + $0xd0] sm:$0xf] }
 0x18a   : > { %v3607_v14 = vpop.permute.xlu0 %1697 }
 0x18b   : > { %v2184_v28 = vsel %vm2158_vm6, %v2151_v12, %v3607_v14  ;;  %v1820_v34 = vpack.c.b16 %v1804_v63, %v1644_v56  ;;  %v1723_v14 = vunpack.c.l.b16 %v2625_v8 }
 0x18d   : > { %v1857_v54 = vshll.u32 %v1820_v34, 16  ;;  %v1739_v16 = vpack.c.b16 %v1723_v14, %v1723_v14 }
 0x18f   : > { %1599 = vrot.lane.b32.xlu2 %v1508_v35, %s2830_s11  ;;  %1597 = vrot.lane.b32.xlu1 %v1501_v2, %s2830_s11  ;;  %v2626_v35 = vld [vmem:[%s3044_s6 + $0xb0] sm:$0xf]  ;;  %v1664_v2 = vpack.c.b16 %v3634_v37, %v3634_v37 }
 0x190   : > { %1975 = vrot.lane.b32.xlu0 %v1944_v61, %s2833_s14  ;;  %v2120_v61 = vsel %vm2092_vm3, %v3492_v49, %v3503_v48  ;;  %v1724_v49 = vunpack.c.l.b16 %v2626_v35  ;;  %v1819_v48 = vpack.c.b16 %v1803_v10, %v1643_v13 }
 0x191   : > { %v3613_v38 = vpop.permute.xlu2 %1673  ;;  %v1778_v32 = vpop.permute.xlu1 %1777  ;;  %v2153_v55 = vsel %vm2125_vm5, %v2120_v61, %v3596_v43  ;;  %v1727_v43 = vunpack.c.l.b16 %v2629_v3 }
 0x192   : > { %v1772_v41 = vpop.permute.xlu0 %1771  ;;  %v2186_v52 = vsel %vm2158_vm6, %v2153_v55, %v3605_v62  ;;  %v2645_v62 = vld [vmem:[%s3044_s6 + $0x3c] sm:$0x1]  ;;  %v1740_v46 = vpack.c.b16 %v1724_v49, %v1724_v49  ;;  %v1850_v50 = vshll.u32 %v1819_v48, 16 }
 0x193   : > { %v2211_v20 = vsel %vm2191_vm7, %v2178_v36, %v1772_v41  ;;  %v2217_v41 = vsel %vm2191_vm7, %v2184_v28, %v1778_v32  ;;  %v2219_v57 = vsel %vm2191_vm7, %v2186_v52, %v3576_v59  ;;  %v1743_v60 = vpack.c.b16 %v1727_v43, %v1727_v43 }
 0x194   : > { %v2250_v32 = vsel %vm2224_vm8, %v2217_v41, %v3593_v40  ;;  %v1807_v40 = vunpack.c.l.b16 %v2645_v62  ;;  %v1855_v59 = vshrl.u32 %v1820_v34, 16  ;;  %v2129_v52 = vsel %vm2125_vm5, %v3508_v7, %v3603_v30 }
 0x195   : > { %v2290_v36 = vunpack.c.l.b16 %v2250_v32 }
 0x196   : > { %v1823_v10 = vpack.c.b16 %v1807_v40, %v3628_v53 }
 0x197   : > { %1607 = vrot.lane.b32.xlu1 %v1536_v39, %s2830_s11  ;;  %1677 = vrot.lane.b32.xlu2 %v1659_v4, %s2831_s12  ;;  %v2646_v4 = vld [vmem:[%s3044_s6 + $0x44] sm:$0x1]  ;;  %s3787_s6 = scalar_lea.vmem %s3863_s4, %s2737_s5 }
 0x198   : > { %1605 = vrot.lane.b32.xlu0 %v1529_v29, %s2830_s11  ;;  %v1808_v18 = vunpack.c.l.b16 %v2646_v4  ;;  %v1876_v3 = vshrl.u32 %v1823_v10, 16 }
 0x199   : > { %v3644_v33 = vpop.permute.xlu2 %1683  ;;  %v1964_v9 = vpop.permute.xlu1 %1963 }
 0x19a   : > { %v1962_v21 = vpop.permute.xlu0 %1961  ;;  %v2244_v24 = vsel %vm2224_vm8, %v2211_v20, %v1964_v9  ;;  %v1848_v9 = vshrl.u32 %v1819_v48, 16 }
 0x19b   : > { %v2242_v1 = vsel %vm2224_vm8, %v2209_v51, %v1962_v21  ;;  %v2287_v19 = vunpack.c.l.b16 %v2244_v24  ;;  %v1852_v21 = vrot.slane %v1850_v50, 1  ;;  %v1824_v51 = vpack.c.b16 %v1808_v18, %v3634_v37 }
 0x19c   : > { %v2286_v25 = vunpack.c.l.b16 %v2242_v1  ;;  %v1859_v24 = vrot.slane %v1857_v54, 1 }
 0x19d   : > { %v1885_v63 = vshll.u32 %v1824_v51, 16  ;;  %v1883_v37 = vshrl.u32 %v1824_v51, 16 }
 0x19e   : > { %v2298_v39 = vpack.c.b16 %v2287_v19, %v2286_v25  ;;  %v1860_v61 = vor.u32 %v1859_v24, %v1855_v59  ;;  %v1878_v25 = vshll.u32 %v1823_v10, 16 }
 0x19f   : > { %1685 = vrot.lane.b32.xlu1 %v1663_v5, %s2831_s12  ;;  %1687 = vrot.lane.b32.xlu2 %v1664_v2, %s2831_s12  ;;  %v1728_v5 = vunpack.c.l.b16 %v2630_v6  ;;  %v1853_v2 = vor.u32 %v1852_v21, %v1848_v9 }
 0x1a0   : > { %1679 = vrot.lane.b32.xlu0 %v1660_v31, %s2831_s12  ;;  %2731 = vmatmul.msk.bf16.vlgmr.msra.gmra.mxu2 %vm2317_vm9, %v2298_v39  ;;  %v1887_v31 = vrot.slane %v1885_v63, 1  ;;  %v1880_v55 = vrot.slane %v1878_v25, 1 }
 0x1a1   : > { %v3676_v13 = vpop.permute.xlu2 %1761  ;;  %v1594_v44 = vpop.permute.xlu1 %1593  ;;  %v1744_v12 = vpack.c.b16 %v1728_v5, %v1728_v5 }
 0x1a2   : > { %v1972_v29 = vpop.permute.xlu0 %1971  ;;  %v1888_v41 = vor.u32 %v1887_v31, %v1883_v37  ;;  %v1881_v39 = vor.u32 %v1880_v55, %v1876_v3  ;;  %v2127_v14 = vsel %vm2125_vm5, %v3512_v22, %v1594_v44 }
 0x1a3   : > { %v2252_v47 = vsel %vm2224_vm8, %v2219_v57, %v1972_v29  ;;  %v2160_v32 = vsel %vm2158_vm6, %v2127_v14, %v3613_v38 }
 0x1a4   : > { %v2291_v56 = vunpack.c.l.b16 %v2252_v47 }
 0x1a6   : > { %v2300_v20 = vpack.c.b16 %v2291_v56, %v2290_v36 }
 0x1a7   : > { %1759 = vrot.lane.b32.xlu1 %v1740_v46, %s2832_s13  ;;  %1765 = vrot.lane.b32.xlu2 %v1743_v60, %s2832_s13 }
 0x1a8   : > { %1757 = vrot.lane.b32.xlu0 %v1739_v16, %s2832_s13  ;;  %2733 = vmatmul.msk.bf16.vlgmr.msra.gmra.mxu3 %vm2317_vm9, %v2300_v20 }
 0x1a9   : > { %v1948_v1 = vpop.permute.xlu2 %1947  ;;  %v1604_v19 = vpop.permute.xlu1 %1603 }
 0x1aa   : > { %v1602_v35 = vpop.permute.xlu0 %1601  ;;  %v2137_v47 = vsel %vm2125_vm5, %v3467_v15, %v1604_v19 }
 0x1ab   : > { %v2135_v44 = vsel %vm2125_vm5, %v3522_v23, %v1602_v35  ;;  %v2170_v60 = vsel %vm2158_vm6, %v2137_v47, %v3644_v33 }
 0x1af   : > { %1949 = vrot.lane.b32.xlu1 %v1853_v2, %s2833_s14  ;;  %1951 = vrot.lane.b32.xlu2 %v1860_v61, %s2833_s14 }
 0x1b0   : > { %1767 = vrot.lane.b32.xlu0 %v1744_v12, %s2832_s13 }
 0x1b1   : > { %v1422_v28 = vpop.permute.xlu2 %1421  ;;  %v1682_v53 = vpop.permute.xlu1 %1681 }
 0x1b2   : > { %v1676_v8 = vpop.permute.xlu0 %1675  ;;  %v2168_v38 = vsel %vm2158_vm6, %v2135_v44, %v1682_v53  ;;  %v2114_v12 = vsel %vm2092_vm3, %v3475_v27, %v1422_v28 }
 0x1b3   : > { %v2162_v34 = vsel %vm2158_vm6, %v2129_v52, %v1676_v8  ;;  %v2201_v16 = vsel %vm2191_vm7, %v2168_v38, %v3676_v13 }
 0x1b7   : > { %1959 = vrot.lane.b32.xlu1 %v1888_v41, %s2833_s14 }
 0x1b8   : > { %1957 = vrot.lane.b32.xlu0 %v1881_v39, %s2833_s14 }
 0x1b9   : > { %v1756_v49 = vpop.permute.xlu1 %1755  ;;  %v1432_v43 = vpop.permute.xlu2 %1431 }
 0x1ba   : > { %v1754_v48 = vpop.permute.xlu0 %1753  ;;  %v2195_v4 = vsel %vm2191_vm7, %v2162_v34, %v1756_v49  ;;  %v2124_v34 = vsel %vm2092_vm3, %v3435_v42, %v1432_v43 }
 0x1bb   : > { %v2228_v62 = vsel %vm2224_vm8, %v2195_v4, %v1948_v1  ;;  %v2193_v29 = vsel %vm2191_vm7, %v2160_v32, %v1754_v48 }
 0x1bc   : > { %v2279_v7 = vunpack.c.l.b16 %v2228_v62 }
 0x1c1   : > { %v1946_v57 = vpop.permute.xlu1 %1945  ;;  %v1622_v18 = vpop.permute.xlu2 %1621 }
 0x1c2   : > { %v1764_v46 = vpop.permute.xlu0 %1763  ;;  %v2226_v50 = vsel %vm2224_vm8, %v2193_v29, %v1946_v57 }
 0x1c3   : > { %v2278_v30 = vunpack.c.l.b16 %v2226_v50  ;;  %v2203_v54 = vsel %vm2191_vm7, %v2170_v60, %v1764_v46 }
 0x1c5   : > { %v2294_v22 = vpack.c.b16 %v2279_v7, %v2278_v30 }
 0x1c7   : > { %2727 = vmatmul.msk.bf16.vlgmr.msra.gmra.mxu0 %vm2317_vm9, %v2294_v22 }
 0x1c9   : > { %v1956_v36 = vpop.permute.xlu1 %1955  ;;  %v1696_v9 = vpop.permute.xlu2 %1695 }
 0x1ca   : > { %v1954_v56 = vpop.permute.xlu0 %1953  ;;  %v2236_v15 = vsel %vm2224_vm8, %v2203_v54, %v1956_v36 }
 0x1cb   : > { %v2234_v40 = vsel %vm2224_vm8, %v2201_v16, %v1954_v56  ;;  %v2283_v6 = vunpack.c.l.b16 %v2236_v15 }
 0x1cc   : > { %v2282_v23 = vunpack.c.l.b16 %v2234_v40 }
 0x1ce   : > { %v2296_v20 = vpack.c.b16 %v2283_v6, %v2282_v23 }
 0x1d0   : > { %2729 = vmatmul.msk.bf16.vlgmr.msra.gmra.mxu1 %vm2317_vm9, %v2296_v20 }
 0x1d1   : > { %v1430_v21 = vpop.permute.xlu1 %1429  ;;  %v1774_v33 = vpop.permute.xlu2 %1773 }
 0x1d2   : > { %v1424_v51 = vpop.permute.xlu0 %1423  ;;  %v2122_v53 = vsel %vm2092_vm3, %v3488_v26, %v1430_v21 }
 0x1d3   : > { %v2116_v61 = vsel %vm2092_vm3, %v3471_v17, %v1424_v51  ;;  %v2155_v48 = vsel %vm2125_vm5, %v2122_v53, %v1622_v18 }
 0x1d9   : > { %v1616_v59 = vpop.permute.xlu1 %1615  ;;  %v1784_v1 = vpop.permute.xlu2 %1783 }
 0x1da   : > { %v1614_v24 = vpop.permute.xlu0 %1613  ;;  %v2149_v25 = vsel %vm2125_vm5, %v2116_v61, %v1616_v59 }
 0x1db   : > { %v2147_v37 = vsel %vm2125_vm5, %v2114_v12, %v1614_v24  ;;  %v2182_v55 = vsel %vm2158_vm6, %v2149_v25, %v1696_v9 }
 0x1e1   : > { %v1694_v5 = vpop.permute.xlu1 %1693  ;;  %v1974_v35 = vpop.permute.xlu2 %1973 }
 0x1e2   : > { %v1624_v10 = vpop.permute.xlu0 %1623  ;;  %v2180_v31 = vsel %vm2158_vm6, %v2147_v37, %v1694_v5 }
 0x1e3   : > { %v2213_v17 = vsel %vm2191_vm7, %v2180_v31, %v1774_v33  ;;  %v2157_v26 = vsel %vm2125_vm5, %v2124_v34, %v1624_v10  ;;  %v3773_v31 = vld [vmem:[%s3861_s2] ss:$0 sm:$0xff] }
 0x1e9   : > { %v1704_v19 = vpop.permute.xlu1 %1703  ;;  %v1600_v3 = vpop.permute.xlu2 %1599 }
 0x1ea   : > { %v1702_v13 = vpop.permute.xlu0 %1701  ;;  %v2190_v62 = vsel %vm2158_vm6, %v2157_v26, %v1704_v19  ;;  %v2133_v16 = vsel %vm2125_vm5, %v3526_v58, %v1600_v3 }
 0x1eb   : > { %v2188_v14 = vsel %vm2158_vm6, %v2155_v48, %v1702_v13  ;;  %v2223_v7 = vsel %vm2191_vm7, %v2190_v62, %v1784_v1 }
 0x1f1   : > { %v1782_v2 = vpop.permute.xlu1 %1781  ;;  %v1678_v29 = vpop.permute.xlu2 %1677 }
 0x1f2   : > { %v1776_v63 = vpop.permute.xlu0 %1775  ;;  %v2221_v4 = vsel %vm2191_vm7, %v2188_v14, %v1782_v2 }
 0x1f3   : > { %v2215_v8 = vsel %vm2191_vm7, %v2182_v55, %v1776_v63  ;;  %v2254_v57 = vsel %vm2224_vm8, %v2221_v4, %v1974_v35  ;;  %v3779_v55 = vld [vmem:[%s3862_s3] ss:$0 sm:$0xff] }
 0x1f4   : > { %v2292_v43 = vunpack.c.l.b16 %v2254_v57 }
 0x1f9   : > { %v1968_v41 = vpop.permute.xlu1 %1967  ;;  %v1688_v22 = vpop.permute.xlu2 %1687 }
 0x1fa   : > { %v1966_v39 = vpop.permute.xlu0 %1965  ;;  %v2248_v27 = vsel %vm2224_vm8, %v2215_v8, %v1968_v41 }
 0x1fb   : > { %v2246_v28 = vsel %vm2224_vm8, %v2213_v17, %v1966_v39  ;;  %v2289_v49 = vunpack.c.l.b16 %v2248_v27 }
 0x1fc   : > { %v2288_v52 = vunpack.c.l.b16 %v2246_v28 }
 0x1fe   : > { %v2299_v32 = vpack.c.b16 %v2289_v49, %v2288_v52 }
 0x200   : > { %2732 = vmatmul.msk.bf16.gmra.mxu2 %vm2317_vm9, %v2299_v32 }
 0x201   : > { %v1598_v46 = vpop.permute.xlu1 %1597  ;;  %v1766_v54 = vpop.permute.xlu2 %1765 }
 0x202   : > { %v1976_v50 = vpop.permute.xlu0 %1975  ;;  %v2131_v40 = vsel %vm2125_vm5, %v3452_v45, %v1598_v46 }
 0x203   : > { %v2256_v42 = vsel %vm2224_vm8, %v2223_v7, %v1976_v50  ;;  %v2164_v20 = vsel %vm2158_vm6, %v2131_v40, %v1678_v29 }
 0x204   : > { %v2293_v30 = vunpack.c.l.b16 %v2256_v42 }
 0x206   : > { %v2301_v47 = vpack.c.b16 %v2293_v30, %v2292_v43 }
 0x208   : > { %2734 = vmatmul.msk.bf16.gmra.mxu3 %vm2317_vm9, %v2301_v47 }
 0x209   : > { %v1608_v18 = vpop.permute.xlu1 %1607  ;;  %v1952_v23 = vpop.permute.xlu2 %1951 }
 0x20a   : > { %v1606_v44 = vpop.permute.xlu0 %1605  ;;  %v2141_v5 = vsel %vm2125_vm5, %v3537_v11, %v1608_v18 }
 0x20b   : > { %v2139_v10 = vsel %vm2125_vm5, %v3541_v0, %v1606_v44  ;;  %v2174_v19 = vsel %vm2158_vm6, %v2141_v5, %v1688_v22 }
 0x211   : > { %v1686_v38 = vpop.permute.xlu1 %1685 }
 0x212   : > { %v1680_v60 = vpop.permute.xlu0 %1679  ;;  %v2172_v1 = vsel %vm2158_vm6, %v2139_v10, %v1686_v38 }
 0x213   : > { %v2166_v15 = vsel %vm2158_vm6, %v2133_v16, %v1680_v60  ;;  %v2205_v2 = vsel %vm2191_vm7, %v2172_v1, %v1766_v54 }
 0x219   : > { %v1760_v36 = vpop.permute.xlu1 %1759 }
 0x21a   : > { %v1758_v56 = vpop.permute.xlu0 %1757  ;;  %v2199_v6 = vsel %vm2191_vm7, %v2166_v15, %v1760_v36 }
 0x21b   : > { %v2232_v9 = vsel %vm2224_vm8, %v2199_v6, %v1952_v23  ;;  %v2197_v21 = vsel %vm2191_vm7, %v2164_v20, %v1758_v56 }
 0x21c   : > { %v2281_v24 = vunpack.c.l.b16 %v2232_v9 }
 0x221   : > { %v1950_v51 = vpop.permute.xlu1 %1949 }
 0x222   : > { %v1768_v33 = vpop.permute.xlu0 %1767  ;;  %v2230_v59 = vsel %vm2224_vm8, %v2197_v21, %v1950_v51 }
 0x223   : > { %v2280_v58 = vunpack.c.l.b16 %v2230_v59  ;;  %v2207_v13 = vsel %vm2191_vm7, %v2174_v19, %v1768_v33  ;;  %v2375_v0 = vpop.f32.mrf.mxu2 }
 0x224   : > { %v2407_v3 = vmul.f32 %v3773_v31, %v2375_v0 }
 0x225   : > { %v2295_v45 = vpack.c.b16 %v2281_v24, %v2280_v58 }
 0x226   : > { %v2427_v41 = vadd.f32 %v3779_v55, %v2407_v3 }
 0x227   : > { %2728 = vmatmul.msk.bf16.gmra.mxu0 %vm2317_vm9, %v2295_v45 }
 0x228   : > { %v2443_v49 = vpack.c.bf16 %v2427_v41, %v2427_v41 }
 0x229   : > { %v1960_v35 = vpop.permute.xlu1 %1959 }
 0x22a   : > { %v1958_v63 = vpop.permute.xlu0 %1957  ;;  %v2240_v61 = vsel %vm2224_vm8, %v2207_v13, %v1960_v35  ;;  %2460 = vst.msk [vmem:[%s3787_s6 + $0x20] sm:$0xf] %vm2451_vm10, %v2443_v49 }
 0x22b   : > { %v2238_v11 = vsel %vm2224_vm8, %v2205_v2, %v1958_v63  ;;  %v2285_v12 = vunpack.c.l.b16 %v2240_v61  ;;  %v2385_v39 = vpop.f32.mrf.mxu3  ;;  %v2377_v17 = vpop.f32.mrf.mxu2 }
 0x22c   : > { %v2284_v25 = vunpack.c.l.b16 %v2238_v11  ;;  %v2408_v48 = vmul.f32 %v3773_v31, %v2377_v17  ;;  %v2411_v52 = vmul.f32 %v3773_v31, %v2385_v39 }
 0x22e   : > { %v2297_v37 = vpack.c.b16 %v2285_v12, %v2284_v25  ;;  %v2428_v4 = vadd.f32 %v3779_v55, %v2408_v48  ;;  %v2431_v29 = vadd.f32 %v3779_v55, %v2411_v52 }
 0x230   : > { %2730 = vmatmul.msk.bf16.gmra.mxu1 %vm2317_vm9, %v2297_v37  ;;  %v2444_v7 = vpack.c.bf16 %v2428_v4, %v2428_v4  ;;  %v2447_v30 = vpack.c.bf16 %v2431_v29, %v2431_v29 }
 0x232   : > { %2461 = vst.msk [vmem:[%s3787_s6 + $0x24] sm:$0xf] %vm2451_vm10, %v2444_v7 }
 0x233   : > { %v2387_v57 = vpop.f32.mrf.mxu3  ;;  %2464 = vst.msk [vmem:[%s3787_s6 + $0x30] sm:$0xf] %vm2451_vm10, %v2447_v30 }
 0x234   : > { %v2412_v43 = vmul.f32 %v3773_v31, %v2387_v57 }
 0x236   : > { %v2432_v22 = vadd.f32 %v3779_v55, %v2412_v43 }
 0x238   : > { %v2448_v60 = vpack.c.bf16 %v2432_v22, %v2432_v22 }
 0x23a   : > { %2465 = vst.msk [vmem:[%s3787_s6 + $0x34] sm:$0xf] %vm2451_vm10, %v2448_v60 }
 0x244   : > { %v2355_v53 = vpop.f32.mrf.mxu0 }
 0x245   : > { %v2399_v8 = vmul.f32 %v3773_v31, %v2355_v53 }
 0x247   : > { %v2419_v27 = vadd.f32 %v3779_v55, %v2399_v8 }
 0x249   : > { %v2435_v28 = vpack.c.bf16 %v2419_v27, %v2419_v27 }
 0x24b   : > { %2452 = vst.msk [vmem:[%s3787_s6] sm:$0xf] %vm2451_vm10, %v2435_v28 }
 0x24c   : > { %v2357_v34 = vpop.f32.mrf.mxu0 }
 0x24d   : > { %v2400_v14 = vmul.f32 %v3773_v31, %v2357_v34  ;;  %v2365_v26 = vpop.f32.mrf.mxu1 }
 0x24e   : > { %v2403_v32 = vmul.f32 %v3773_v31, %v2365_v26 }
 0x24f   : > { %v2420_v62 = vadd.f32 %v3779_v55, %v2400_v14 }
 0x250   : > { %v2423_v46 = vadd.f32 %v3779_v55, %v2403_v32 }
 0x251   : > { %v2436_v50 = vpack.c.bf16 %v2420_v62, %v2420_v62 }
 0x252   : > { %v2439_v42 = vpack.c.bf16 %v2423_v46, %v2423_v46 }
 0x253   : > { %2453 = vst.msk [vmem:[%s3787_s6 + $0x4] sm:$0xf] %vm2451_vm10, %v2436_v50 }
 0x254   : > { %2456 = vst.msk [vmem:[%s3787_s6 + $0x10] sm:$0xf] %vm2451_vm10, %v2439_v42 }
 0x255   : > { %v2367_v47 = vpop.f32.mrf.mxu1 }
 0x256   : > { %v2404_v18 = vmul.f32 %v3773_v31, %v2367_v47 }
 0x258   : > { %v2424_v44 = vadd.f32 %v3779_v55, %v2404_v18 }
 0x25a   : > { %v2440_v38 = vpack.c.bf16 %v2424_v44, %v2424_v44 }
 0x25c   : > { %2457 = vst.msk [vmem:[%s3787_s6 + $0x14] sm:$0xf] %vm2451_vm10, %v2440_v38 }
 0x283   : > { %v2380_v54 = vpop.f32.mrf.mxu2 }
 0x284   : > { %v2409_v36 = vmul.f32 %v3773_v31, %v2380_v54 }
 0x286   : > { %v2429_v15 = vadd.f32 %v3779_v55, %v2409_v36 }
 0x288   : > { %v2445_v9 = vpack.c.bf16 %v2429_v15, %v2429_v15 }
 0x28a   : > { %2462 = vst.msk [vmem:[%s3787_s6 + $0x28] sm:$0xf] %vm2451_vm10, %v2445_v9 }
 0x28b   : > { %v2390_v40 = vpop.f32.mrf.mxu3  ;;  %v2382_v6 = vpop.f32.mrf.mxu2 }
 0x28c   : > { %v2410_v21 = vmul.f32 %v3773_v31, %v2382_v6  ;;  %v2413_v51 = vmul.f32 %v3773_v31, %v2390_v40 }
 0x28e   : > { %v2430_v58 = vadd.f32 %v3779_v55, %v2410_v21  ;;  %v2433_v10 = vadd.f32 %v3779_v55, %v2413_v51 }
 0x290   : > { %v2446_v35 = vpack.c.bf16 %v2430_v58, %v2430_v58  ;;  %v2449_v61 = vpack.c.bf16 %v2433_v10, %v2433_v10 }
 0x292   : > { %2463 = vst.msk [vmem:[%s3787_s6 + $0x2c] sm:$0xf] %vm2451_vm10, %v2446_v35 }
 0x293   : > { %v2392_v1 = vpop.f32.mrf.mxu3  ;;  %2466 = vst.msk [vmem:[%s3787_s6 + $0x38] sm:$0xf] %vm2451_vm10, %v2449_v61 }
 0x294   : > { %v2414_v63 = vmul.f32 %v3773_v31, %v2392_v1 }
 0x296   : > { %v2434_v25 = vadd.f32 %v3779_v55, %v2414_v63 }
 0x298   : > { %v2450_v3 = vpack.c.bf16 %v2434_v25, %v2434_v25 }
 0x29a   : > { %2467 = vst.msk [vmem:[%s3787_s6 + $0x3c] sm:$0xf] %vm2451_vm10, %v2450_v3 }
 0x2a4   : > { %v2360_v56 = vpop.f32.mrf.mxu0 }
 0x2a5   : > { %v2401_v16 = vmul.f32 %v3773_v31, %v2360_v56 }
 0x2a7   : > { %v2421_v23 = vadd.f32 %v3779_v55, %v2401_v16 }
 0x2a9   : > { %v2437_v20 = vpack.c.bf16 %v2421_v23, %v2421_v23 }
 0x2ab   : > { %2454 = vst.msk [vmem:[%s3787_s6 + $0x8] sm:$0xf] %vm2451_vm10, %v2437_v20 }
 0x2ac   : > { %v2362_v33 = vpop.f32.mrf.mxu0 }
 0x2ad   : > { %v2402_v59 = vmul.f32 %v3773_v31, %v2362_v33  ;;  %v2370_v24 = vpop.f32.mrf.mxu1 }
 0x2ae   : > { %v2405_v5 = vmul.f32 %v3773_v31, %v2370_v24 }
 0x2af   : > { %v2422_v45 = vadd.f32 %v3779_v55, %v2402_v59 }
 0x2b0   : > { %v2425_v19 = vadd.f32 %v3779_v55, %v2405_v5 }
 0x2b1   : > { %v2438_v13 = vpack.c.bf16 %v2422_v45, %v2422_v45 }
 0x2b2   : > { %v2441_v2 = vpack.c.bf16 %v2425_v19, %v2425_v19 }
 0x2b3   : > { %2455 = vst.msk [vmem:[%s3787_s6 + $0xc] sm:$0xf] %vm2451_vm10, %v2438_v13 }
 0x2b4   : > { %2458 = vst.msk [vmem:[%s3787_s6 + $0x18] sm:$0xf] %vm2451_vm10, %v2441_v2 }
 0x2b5   : > { %v2372_v11 = vpop.f32.mrf.mxu1 }
 0x2b6   : > { %v2406_v12 = vmul.f32 %v3773_v31, %v2372_v11 }
 0x2b8   : > { %v2426_v37 = vadd.f32 %v3779_v55, %v2406_v12 }
 0x2ba   : > { %v2442_v0 = vpack.c.bf16 %v2426_v37, %v2426_v37 }
 0x2bc   : > { %2459 = vst.msk [vmem:[%s3787_s6 + $0x1c] sm:$0xf] %vm2451_vm10, %v2442_v0 }
 0x2bd PF: > { %p11_p9 = scmp.ge.s32.totalorder %s2876_s19, 4   ;;  %s3864_s15 = smov %s2820_s16 }
 0x2be   : > { %s3865_s16 = smov %s2885_s22  ;;  %s3866_s17 = smov %s2876_s19 }
 0x2bf   :  { %13 = sbr.rel (!%p11_p9) target bundleno = 2 (0x2), region = 117 }

</bundles_post_ra>
